<compile_context>
chip_gen: v5e
topology: v5e:2x2
jax: 0.10.0
libtpu: 0.0.40
codegen_flags: <defaults>
</compile_context>

<pallas_src>
import functools

import jax
import jax.numpy as jnp
from jax import lax
from jax.experimental import pallas as pl
from jax.experimental.pallas import tpu as pltpu

_INV_SQRT2 = 0.7071067811865476


def _round_up(x, m):
    return (x + m - 1) // m * m


def _gelu_f32(h):
    # Exact erf GELU (matches torch.nn.GELU(approximate='none')), f32.
    return 0.5 * h * (1.0 + lax.erf(h * _INV_SQRT2))


# ----------------------------------------------------------------------------
# Kernels.  Grid = (row tiles i [parallel], hidden tiles k [arbitrary/red.]).
#   x_ref:  (tm, dim_pad)   bf16 row tile of input          (k-invariant)
#   w1_ref: (dim_pad, th)   bf16 hidden-slice of W1
#   b1_ref: (1, th)         f32
#   w2_ref: (th, dim_pad)   bf16 hidden-slice of W2
#   b2_ref: (1, dim_pad)    f32                              (k-invariant)
#   o_ref:  (tm, dim_pad)   output tile                      (k-invariant)
# ----------------------------------------------------------------------------
def _ffn_kernel_acc_out(x_ref, w1_ref, b1_ref, w2_ref, b2_ref, o_ref):
    """float32 output: accumulate the reduction directly into resident o_ref."""
    k = pl.program_id(1)

    @pl.when(k == 0)
    def _():
        o_ref[...] = jnp.zeros_like(o_ref)

    # First linear on this hidden slice (bf16 MXU, f32 accumulate).
    h = jnp.dot(x_ref[...], w1_ref[...], preferred_element_type=jnp.float32)
    h = _gelu_f32(h + b1_ref[...])

    # Second linear partial sum, accumulated straight into the output block.
    o_ref[...] += jnp.dot(h.astype(w2_ref.dtype), w2_ref[...],
                          preferred_element_type=jnp.float32)

    @pl.when(k == pl.num_programs(1) - 1)
    def _():
        o_ref[...] += b2_ref[...]


def _ffn_kernel_acc_scratch(x_ref, w1_ref, b1_ref, w2_ref, b2_ref, o_ref, acc_ref):
    """Non-f32 output: f32 accumulator scratch, cast once at the last k step."""
    k = pl.program_id(1)

    @pl.when(k == 0)
    def _():
        acc_ref[...] = jnp.zeros_like(acc_ref)

    h = jnp.dot(x_ref[...], w1_ref[...], preferred_element_type=jnp.float32)
    h = _gelu_f32(h + b1_ref[...])
    acc_ref[...] += jnp.dot(h.astype(w2_ref.dtype), w2_ref[...],
                            preferred_element_type=jnp.float32)

    @pl.when(k == pl.num_programs(1) - 1)
    def _():
        o_ref[...] = (acc_ref[...] + b2_ref[...]).astype(o_ref.dtype)


# ----------------------------------------------------------------------------
# VMEM budgeting and tile selection.
# ----------------------------------------------------------------------------
def _vmem_budget_bytes():
    cap = 64 * 1024 * 1024  # conservative fallback (v7x per-TC VMEM)
    try:
        cap = int(pltpu.get_tpu_info().vmem_capacity_bytes)
    except Exception:
        pass
    # ~50 MiB on v7x (64 MiB/TC), ~100 MiB on v5e/v6e (128 MiB): leaves room
    # for compiler internal scratch / semaphores while keeping double-buffering.
    return (cap * 25) // 32


def _vmem_estimate(tm, th, dim_pad, x_bytes, w_bytes, out_bytes, use_scratch):
    est = 2 * tm * dim_pad * x_bytes        # x tiles (pipelined across row tiles)
    est += 2 * dim_pad * th * w_bytes       # W1 slices (double-buffered)
    est += 2 * th * dim_pad * w_bytes       # W2 slices (double-buffered)
    est += 2 * (th + dim_pad) * 4           # biases
    est += 2 * tm * dim_pad * out_bytes     # output tiles
    if use_scratch:
        est += tm * dim_pad * 4             # f32 accumulator scratch
    est += tm * th * (4 + w_bytes)          # f32 intermediate h + bf16 copy
    est += 2 * 1024 * 1024                  # compiler internal scratch headroom
    return est


# Preference order: large row tiles first (raise arithmetic intensity against
# streaming W1/W2 from HBM), then large hidden tiles (fewer reduction steps).
_TILE_CANDIDATES = (
    (512, 1024), (512, 512), (384, 1024), (384, 512), (256, 1024), (256, 512),
    (512, 256), (256, 256), (128, 512), (128, 256), (128, 128), (64, 256),
    (64, 128), (32, 128), (16, 128),
)


def _select_tiles(M, dim_pad, hidden, x_bytes, w_bytes, out_bytes,
                  use_scratch, budget):
    M16 = _round_up(M, 16)
    hid128 = _round_up(hidden, 128)
    chosen = (16, 128)
    for tm, th in _TILE_CANDIDATES:
        tm_c = _round_up(min(tm, M16), 16)
        th_c = _round_up(min(th, hid128), 128)
        if _vmem_estimate(tm_c, th_c, dim_pad, x_bytes, w_bytes, out_bytes,
                          use_scratch) <= budget:
            chosen = (tm_c, th_c)
            break
    return chosen


# ----------------------------------------------------------------------------
# Wrapper.
# ----------------------------------------------------------------------------
def feed_forward(x, w1, b1, w2, b2):
    """x: (..., dim). Weights stored as (in, out), i.e. transposed vs torch."""
    orig_shape = x.shape
    dim = orig_shape[-1]
    hidden = w1.shape[1]
    assert w1.shape == (dim, hidden)
    assert w2.shape == (hidden, dim)

    out_dtype = x.dtype
    # bf16 MXU path for f32 inputs (accumulation stays f32 inside the kernel).
    compute_dtype = jnp.bfloat16 if x.dtype == jnp.float32 else x.dtype

    x2 = x.reshape(-1, dim).astype(compute_dtype)
    w1c = w1.astype(compute_dtype)
    w2c = w2.astype(compute_dtype)
    b1c = b1.astype(jnp.float32)
    b2c = b2.astype(jnp.float32)

    M = x2.shape[0]
    dim_pad = _round_up(dim, 128)

    use_scratch = out_dtype != jnp.float32
    x_bytes = jnp.dtype(compute_dtype).itemsize
    w_bytes = jnp.dtype(compute_dtype).itemsize
    out_bytes = jnp.dtype(out_dtype).itemsize

    budget = _vmem_budget_bytes()
    tm_eff, th_eff = _select_tiles(M, dim_pad, hidden, x_bytes, w_bytes,
                                   out_bytes, use_scratch, budget)

    # Megacore (v7x): make sure the "parallel" row axis has >= 2 tiles when the
    # problem is big enough, so both TensorCores get work.
    M16 = _round_up(M, 16)
    if M16 <= tm_eff and M16 > 16:
        tm_eff = _round_up((M16 + 1) // 2, 16)

    M_pad = _round_up(M16, tm_eff)
    hidden_pad = _round_up(hidden, th_eff)

    # Zero padding is exact: padded W1 cols / b1 entries are 0 => GELU(0)=0 and
    # zero W2 rows contribute nothing; padded rows / dim cols are sliced off.
    if (M_pad, dim_pad) != (M, dim):
        x2 = jnp.pad(x2, ((0, M_pad - M), (0, dim_pad - dim)))
    if (dim_pad, hidden_pad) != (dim, hidden):
        w1c = jnp.pad(w1c, ((0, dim_pad - dim), (0, hidden_pad - hidden)))
        w2c = jnp.pad(w2c, ((0, hidden_pad - hidden), (0, dim_pad - dim)))
    if hidden_pad != hidden:
        b1c = jnp.pad(b1c, (0, hidden_pad - hidden))
    if dim_pad != dim:
        b2c = jnp.pad(b2c, (0, dim_pad - dim))

    b1_2d = b1c.reshape(1, hidden_pad)
    b2_2d = b2c.reshape(1, dim_pad)

    grid = (M_pad // tm_eff, hidden_pad // th_eff)

    in_specs = [
        pl.BlockSpec((tm_eff, dim_pad), lambda i, k: (i, 0)),   # x rows (k-inv)
        pl.BlockSpec((dim_pad, th_eff), lambda i, k: (0, k)),   # W1 slice
        pl.BlockSpec((1, th_eff), lambda i, k: (0, k)),         # b1 slice
        pl.BlockSpec((th_eff, dim_pad), lambda i, k: (k, 0)),   # W2 slice
        pl.BlockSpec((1, dim_pad), lambda i, k: (0, 0)),        # b2 (k-inv)
    ]
    out_specs = pl.BlockSpec((tm_eff, dim_pad), lambda i, k: (i, 0))

    if use_scratch:
        kernel = _ffn_kernel_acc_scratch
        scratch_shapes = [pltpu.VMEM((tm_eff, dim_pad), jnp.float32)]
    else:
        kernel = _ffn_kernel_acc_out
        scratch_shapes = []

    out = pl.pallas_call(
        kernel,
        out_shape=jax.ShapeDtypeStruct((M_pad, dim_pad), out_dtype),
        grid_spec=pltpu.PrefetchScalarGridSpec(
            num_scalar_prefetch=0,
            grid=grid,
            in_specs=in_specs,
            out_specs=out_specs,
            scratch_shapes=scratch_shapes,
        ),
        compiler_params=pltpu.CompilerParams(
            dimension_semantics=("parallel", "arbitrary"),
            vmem_limit_bytes=int(budget),
        ),
    )(x2, w1c, b1_2d, w2c, b2_2d)

    return out[:M, :dim].reshape(orig_shape)


# ----------------------------------------------------------------------------
# References for testing.
# ----------------------------------------------------------------------------
def _reference_f32(x, w1, b1, w2, b2):
    h = jnp.dot(x, w1, precision=lax.Precision.HIGHEST) + b1
    h = _gelu_f32(h)
    return jnp.dot(h, w2, precision=lax.Precision.HIGHEST) + b2


def _reference_bf16(x, w1, b1, w2, b2):
    bf = jnp.bfloat16
    h = jnp.dot(x.astype(bf), w1.astype(bf), precision=lax.Precision.HIGHEST,
                preferred_element_type=jnp.float32) + b1
    h = _gelu_f32(h)
    return jnp.dot(h.astype(bf), w2.astype(bf), precision=lax.Precision.HIGHEST,
                   preferred_element_type=jnp.float32) + b2


if __name__ == "__main__":
    key = jax.random.PRNGKey(0)

    def make_params(k, dim, hidden):
        kw1, kb1, kw2, kb2 = jax.random.split(k, 4)
        lim1 = 1.0 / jnp.sqrt(jnp.float32(dim))
        lim2 = 1.0 / jnp.sqrt(jnp.float32(hidden))
        w1 = jax.random.uniform(kw1, (dim, hidden), minval=-lim1, maxval=lim1,
                                dtype=jnp.float32)
        b1 = jax.random.uniform(kb1, (hidden,), minval=-lim1, maxval=lim1,
                                dtype=jnp.float32)
        w2 = jax.random.uniform(kw2, (hidden, dim), minval=-lim2, maxval=lim2,
                                dtype=jnp.float32)
        b2 = jax.random.uniform(kb2, (dim,), minval=-lim2, maxval=lim2,
                                dtype=jnp.float32)
        return w1, b1, w2, b2

    ffn = jax.jit(feed_forward)

    def check(batch, seq, dim, hidden_dim, key):
        kx, kp, key = jax.random.split(key, 3)
        x = jax.random.normal(kx, (batch, seq, dim), dtype=jnp.float32)
        w1, b1, w2, b2 = make_params(kp, dim, hidden_dim)
        y = ffn(x, w1, b1, w2, b2)
        jax.block_until_ready(y)
        assert y.shape == x.shape

        # Tight check against a bf16-matmul / f32-accumulate reference
        # (same arithmetic the kernel performs).
        y_bf = _reference_bf16(x, w1, b1, w2, b2)
        err_bf = float(jnp.max(jnp.abs(y - y_bf)))
        assert jnp.allclose(y, y_bf, atol=2e-3, rtol=2e-3), err_bf

        # Loose check against the exact f32 torch-equivalent reference
        # (documents the bf16-MXU accuracy tradeoff).
        y_f32 = _reference_f32(x, w1, b1, w2, b2)
        err_f32 = float(jnp.max(jnp.abs(y - y_f32)))
        assert jnp.allclose(y, y_f32, atol=3e-2, rtol=3e-2), err_f32
        return key

    # Case 1: lane/MXU-aligned small shapes (exercises >=2 row tiles).
    key = check(batch=2, seq=64, dim=128, hidden_dim=256, key=key)
    # Case 2: unaligned shapes exercise the zero-padding path.
    key = check(batch=2, seq=5, dim=48, hidden_dim=100, key=key)

    print("KERNEL_OK")
</pallas_src>

<mosaic_0001>
module attributes {stable_mosaic.version = 11 : i64} {
  func.func @_ffn_kernel_acc_out(%arg0: i32, %arg1: i32, %arg2: memref<64x128xbf16, #tpu.memory_space<vmem>>, %arg3: memref<128x256xbf16, #tpu.memory_space<vmem>>, %arg4: memref<1x256xf32, #tpu.memory_space<vmem>>, %arg5: memref<256x128xbf16, #tpu.memory_space<vmem>>, %arg6: memref<1x128xf32, #tpu.memory_space<vmem>>, %arg7: memref<64x128xf32, #tpu.memory_space<vmem>>) attributes {dimension_semantics = [#tpu.dimension_semantics<parallel>, #tpu.dimension_semantics<arbitrary>], iteration_bounds = array<i64: 2, 1>, scalar_prefetch = 0 : i64, scratch_operands = 0 : i64, tpu.core_type = #tpu.core_type<tc>, window_params = [{transform_indices = @transform_0, window_bounds = array<i64: 64, 128>}, {transform_indices = @transform_1, window_bounds = array<i64: 128, 256>}, {transform_indices = @transform_2, window_bounds = array<i64: 1, 256>}, {transform_indices = @transform_3, window_bounds = array<i64: 256, 128>}, {pipeline_mode = #tpu.pipeline_mode<synchronous>, transform_indices = @transform_4, window_bounds = array<i64: 1, 128>}, {transform_indices = @transform_5, window_bounds = array<i64: 64, 128>}]} {
    %c0_i32 = arith.constant 0 : i32
    %0 = arith.cmpi eq, %arg1, %c0_i32 : i32
    %1 = arith.extui %0 : i1 to i32
    %c0_i32_0 = arith.constant 0 : i32
    %2 = arith.cmpi ne, %1, %c0_i32_0 : i32
    scf.if %2 {
      %cst_18 = arith.constant 0.000000e+00 : f32
      %26 = vector.broadcast %cst_18 : f32 to vector<64x128xf32>
      %c0_19 = arith.constant 0 : index
      %c0_20 = arith.constant 0 : index
      %27 = vector.load %arg7[%c0_19, %c0_20] : memref<64x128xf32, #tpu.memory_space<vmem>>, vector<64x128xf32>
      tpu.vector_store %arg7[%c0_19, %c0_20], %26 {strides = array<i32>} : memref<64x128xf32, #tpu.memory_space<vmem>>, vector<64x128xf32>,
    } else {
    }
    %c0 = arith.constant 0 : index
    %c0_1 = arith.constant 0 : index
    %3 = vector.load %arg2[%c0, %c0_1] : memref<64x128xbf16, #tpu.memory_space<vmem>>, vector<64x128xbf16>
    %c0_2 = arith.constant 0 : index
    %c0_3 = arith.constant 0 : index
    %4 = vector.load %arg3[%c0_2, %c0_3] : memref<128x256xbf16, #tpu.memory_space<vmem>>, vector<128x256xbf16>
    %cst = arith.constant dense<0.000000e+00> : vector<64x256xf32>
    %5 = tpu.matmul %3, %4, %cst {dimension_numbers = #tpu.dot_dimension_numbers<[1], [0], [0], [1], [0, 0, 1, 1], [], []>} : vector<64x128xbf16>, vector<128x256xbf16>, vector<64x256xf32> -> vector<64x256xf32>
    %c0_4 = arith.constant 0 : index
    %c0_5 = arith.constant 0 : index
    %6 = vector.load %arg4[%c0_4, %c0_5] : memref<1x256xf32, #tpu.memory_space<vmem>>, vector<1x256xf32>
    %7 = vector.broadcast %6 : vector<1x256xf32> to vector<64x256xf32>
    %8 = arith.addf %5, %7 : vector<64x256xf32>
    %cst_6 = arith.constant 5.000000e-01 : f32
    %9 = vector.broadcast %cst_6 : f32 to vector<64x256xf32>
    %10 = arith.mulf %9, %8 : vector<64x256xf32>
    %cst_7 = arith.constant 0.707106769 : f32
    %11 = vector.broadcast %cst_7 : f32 to vector<64x256xf32>
    %12 = arith.mulf %8, %11 : vector<64x256xf32>
    %13 = math.erf %12 : vector<64x256xf32>
    %cst_8 = arith.constant 1.000000e+00 : f32
    %14 = vector.broadcast %cst_8 : f32 to vector<64x256xf32>
    %15 = arith.addf %14, %13 : vector<64x256xf32>
    %16 = arith.mulf %10, %15 : vector<64x256xf32>
    %c0_9 = arith.constant 0 : index
    %c0_10 = arith.constant 0 : index
    %17 = vector.load %arg7[%c0_9, %c0_10] : memref<64x128xf32, #tpu.memory_space<vmem>>, vector<64x128xf32>
    %18 = arith.truncf %16 : vector<64x256xf32> to vector<64x256xbf16>
    %c0_11 = arith.constant 0 : index
    %c0_12 = arith.constant 0 : index
    %19 = vector.load %arg5[%c0_11, %c0_12] : memref<256x128xbf16, #tpu.memory_space<vmem>>, vector<256x128xbf16>
    %cst_13 = arith.constant dense<0.000000e+00> : vector<64x128xf32>
    %20 = tpu.matmul %18, %19, %cst_13 {dimension_numbers = #tpu.dot_dimension_numbers<[1], [0], [0], [1], [0, 0, 1, 1], [], []>} : vector<64x256xbf16>, vector<256x128xbf16>, vector<64x128xf32> -> vector<64x128xf32>
    %21 = arith.addf %17, %20 : vector<64x128xf32>
    %c0_14 = arith.constant 0 : index
    %c0_15 = arith.constant 0 : index
    %22 = vector.load %arg7[%c0_14, %c0_15] : memref<64x128xf32, #tpu.memory_space<vmem>>, vector<64x128xf32>
    tpu.vector_store %arg7[%c0_14, %c0_15], %21 {strides = array<i32>} : memref<64x128xf32, #tpu.memory_space<vmem>>, vector<64x128xf32>,
    %c0_i32_16 = arith.constant 0 : i32
    %23 = arith.cmpi eq, %arg1, %c0_i32_16 : i32
    %24 = arith.extui %23 : i1 to i32
    %c0_i32_17 = arith.constant 0 : i32
    %25 = arith.cmpi ne, %24, %c0_i32_17 : i32
    scf.if %25 {
      %c0_18 = arith.constant 0 : index
      %c0_19 = arith.constant 0 : index
      %26 = vector.load %arg7[%c0_18, %c0_19] : memref<64x128xf32, #tpu.memory_space<vmem>>, vector<64x128xf32>
      %c0_20 = arith.constant 0 : index
      %c0_21 = arith.constant 0 : index
      %27 = vector.load %arg6[%c0_20, %c0_21] : memref<1x128xf32, #tpu.memory_space<vmem>>, vector<1x128xf32>
      %28 = vector.broadcast %27 : vector<1x128xf32> to vector<64x128xf32>
      %29 = arith.addf %26, %28 : vector<64x128xf32>
      %c0_22 = arith.constant 0 : index
      %c0_23 = arith.constant 0 : index
      %30 = vector.load %arg7[%c0_22, %c0_23] : memref<64x128xf32, #tpu.memory_space<vmem>>, vector<64x128xf32>
      tpu.vector_store %arg7[%c0_22, %c0_23], %29 {strides = array<i32>} : memref<64x128xf32, #tpu.memory_space<vmem>>, vector<64x128xf32>,
    } else {
    }
    return
  }
  func.func @transform_0(%arg0: i32, %arg1: i32) -> (i32, i32) {
    %c0_i32 = arith.constant 0 : i32
    %c0_i32_0 = arith.constant 0 : i32
    return %arg0, %c0_i32 : i32, i32
  }
  func.func @transform_1(%arg0: i32, %arg1: i32) -> (i32, i32) {
    %c0_i32 = arith.constant 0 : i32
    %c0_i32_0 = arith.constant 0 : i32
    return %c0_i32, %arg1 : i32, i32
  }
  func.func @transform_2(%arg0: i32, %arg1: i32) -> (i32, i32) {
    %c0_i32 = arith.constant 0 : i32
    %c0_i32_0 = arith.constant 0 : i32
    return %c0_i32, %arg1 : i32, i32
  }
  func.func @transform_3(%arg0: i32, %arg1: i32) -> (i32, i32) {
    %c0_i32 = arith.constant 0 : i32
    %c0_i32_0 = arith.constant 0 : i32
    return %arg1, %c0_i32 : i32, i32
  }
  func.func @transform_4(%arg0: i32, %arg1: i32) -> (i32, i32) {
    %c0_i32 = arith.constant 0 : i32
    %c0_i32_0 = arith.constant 0 : i32
    %c0_i32_1 = arith.constant 0 : i32
    return %c0_i32, %c0_i32_0 : i32, i32
  }
  func.func @transform_5(%arg0: i32, %arg1: i32) -> (i32, i32) {
    %c0_i32 = arith.constant 0 : i32
    %c0_i32_0 = arith.constant 0 : i32
    return %arg0, %c0_i32 : i32, i32
  }
}

</mosaic_0001>

<bundles_post_ra>
// kernel: feed_forward.1
= control target key start
LH: loop header
LB: loop body
LE: loop exit
PB: predicated region body
PF: predicated region fallthrough
CT: control target
= control target key end

     0   :  { %10 = vsyncpa [#allocation3], 0  ;;  %s2920_s0 = inlined_call_operand.vmem [shape: bf16[128,128], index: 0, kind: input, shape index: {}]   ;;  %s2921_s1 = inlined_call_operand.vmem [shape: bf16[128,256], index: 1, kind: input, shape index: {}]   ;;  %s2922_s2 = inlined_call_operand.vmem [shape: f32[1,256], index: 2, kind: input, shape index: {}]   ;;  %s2923_s3 = inlined_call_operand.vmem [shape: bf16[256,128], index: 3, kind: input, shape index: {}]   ;;  %s2924_s4 = inlined_call_operand.vmem [shape: f32[1,128], index: 4, kind: input, shape index: {}]   ;;  %s2925_s5 = inlined_call_operand.hbm [shape: f32[128,128], index: 5, kind: output, shape index: {}]  }
   0x1   :  { %12 = vsyncpa [#allocation3 + $0x1], 0  ;;  %s2002_s18 = smov 0   ;;  %s2004_s19 = smov 0  }
   0x2   :  { %s2006_s20 = smov 0   ;;  %s2008_s21 = smov 0  }
   0x3   :  { %s2010_s22 = smov 0   ;;  %s2012_s23 = smov 0  }
   0x4 LB: > { %s1586_s24 = sadd.s32 4294967295, %s1968_s23   ;;  %s1587_s25 = sadd.s32 4294967294, %s1968_s23   ;;  %s1968_s23 = sphi %s2012_s23, %s18_s23   ;;  %s1964_s22 = sphi %s2010_s22, %s2983_s22   ;;  %s1960_s21 = sphi %s2008_s21, %s2982_s21   ;;  %s1956_s20 = sphi %s2006_s20, %s2981_s20   ;;  %s1952_s19 = sphi %s2004_s19, %s2980_s19   ;;  %s1948_s18 = sphi %s2002_s18, %s2979_s18  }
   0x5   : > { %s30_s26 = sadd.s32 1, %s1964_s22  ;;  %s162_s27 = sadd.s32 1, %s1956_s20 }
   0x6   : > { %p32_p0 = scmp.ge.s32.totalorder %s30_s26, 2  ;;  %p172_p1 = scmp.ne.s32.totalorder %s1956_s20, %s1952_s19 }
   0x7   : > { %p173_p2 = scmp.eq.s32.totalorder %s1586_s24, 1  ;;  %p178_p3 = scmp.ne.s32.totalorder %s1952_s19, %s1948_s18 }
   0x8   : > { %s2985_s26 = smov (%p32_p0, %s30_s26), 0  ;;  %p179_p5 = scmp.eq.s32.totalorder %s1587_s25, 1 }
   0x9   : > { %p2042_p4 = por %p173_p2, %p172_p1  ;;  %s159_s29 = ssub.s32 %s1964_s22, %s2985_s26 }
   0xa   : > { %p1593_p6 = scmp.ge.s32.totalorder %s1968_s23, 1  ;;  %p160_p7 = scmp.eq.s32.totalorder %s159_s29, 0 }
   0xb   : > { %p2049_p8 = por %p179_p5, %p178_p3  ;;  %p235_p9 = scmp.lt.s32.totalorder %s1968_s23, 3 }
   0xc   : > { %s2055_s6 = scalar_select %p160_p7, %s1956_s20, %s162_s27  }
   0xd   : > { %p236_p10 = pnand %p1593_p6, %p235_p9 }
   0xf   : > { %239 = sbr.rel (%p236_p10) target bundleno = 534 (0x216), region = 40 }
  0x14   : > { %v1671_v0 = vld [vmem:[%s2921_s1 + $0x70] sm:$0xf]  ;;  %v1781_v1 = vld [vmem:[%s2921_s1 + $0x74] sm:$0xf0]  ;;  %v1780_v2 = vld [vmem:[%s2921_s1 + $0x74] sm:$0xf] }
  0x15   : > { %v1672_v3 = vor.u32 %v1781_v1, %v1671_v0  ;;  %v1673_v4 = vld [vmem:[%s2921_s1 + $0x78] sm:$0xf0]  ;;  %v1663_v5 = vld [vmem:[%s2921_s1 + $0x60] sm:$0xf]  ;;  %v1779_v6 = vld [vmem:[%s2921_s1 + $0x64] sm:$0xf0] }
  0x16   : > { %v1676_v7 = vor.u32 %v1780_v2, %v1673_v4  ;;  %v1778_v8 = vld [vmem:[%s2921_s1 + $0x64] sm:$0xf]  ;;  %v1665_v9 = vld [vmem:[%s2921_s1 + $0x68] sm:$0xf0]  ;;  %v1664_v10 = vor.u32 %v1779_v6, %v1663_v5  ;;  %v1655_v12 = vld [vmem:[%s2921_s1 + $0x50] sm:$0xf] }
  0x17   : > { %447 = vmatpush.bf16.msra.mxu0 %v1672_v3  ;;  %v1668_v11 = vor.u32 %v1778_v8, %v1665_v9  ;;  %v1777_v13 = vld [vmem:[%s2921_s1 + $0x54] sm:$0xf0]  ;;  %v1776_v14 = vld [vmem:[%s2921_s1 + $0x54] sm:$0xf]  ;;  %v1657_v15 = vld [vmem:[%s2921_s1 + $0x58] sm:$0xf0] }
  0x18   : > { %476 = vmatpush.bf16.msra.mxu1 %v1676_v7  ;;  %v1656_v16 = vor.u32 %v1777_v13, %v1655_v12  ;;  %v1660_v17 = vor.u32 %v1776_v14, %v1657_v15  ;;  %v1647_v18 = vld [vmem:[%s2921_s1 + $0x40] sm:$0xf]  ;;  %v1775_v19 = vld [vmem:[%s2921_s1 + $0x44] sm:$0xf0]  ;;  %v1774_v20 = vld [vmem:[%s2921_s1 + $0x44] sm:$0xf] }
  0x19   : > { %v1649_v21 = vld [vmem:[%s2921_s1 + $0x48] sm:$0xf0]  ;;  %v1648_v22 = vor.u32 %v1775_v19, %v1647_v18  ;;  %v1639_v24 = vld [vmem:[%s2921_s1 + $0x30] sm:$0xf]  ;;  %v1773_v25 = vld [vmem:[%s2921_s1 + $0x34] sm:$0xf0] }
  0x1a   : > { %v1652_v23 = vor.u32 %v1774_v20, %v1649_v21  ;;  %v1772_v26 = vld [vmem:[%s2921_s1 + $0x34] sm:$0xf]  ;;  %v1641_v27 = vld [vmem:[%s2921_s1 + $0x38] sm:$0xf0]  ;;  %s1595_s17 = sshll.u32 %s1960_s21, 3  ;;  %v1640_v28 = vor.u32 %v1773_v25, %v1639_v24  ;;  %v1795_v15 = vld [vmem:[%s2923_s3 + $0x68] sm:$0xff] }
  0x1b   : > { %448 = vmatpush.bf16.msra.mxu0 %v1664_v10  ;;  %v1644_v29 = vor.u32 %v1772_v26, %v1641_v27  ;;  %v1631_v30 = vld [vmem:[%s2921_s1 + $0x20] sm:$0xf]  ;;  %v1771_v31 = vld [vmem:[%s2921_s1 + $0x24] sm:$0xf0]  ;;  %p278_p11 = scmp.lt.s32.totalorder %s1595_s17, 15  ;;  %v1789_v60 = vld [vmem:[%s2923_s3 + $0x38] sm:$0xff] }
  0x1c   : > { %477 = vmatpush.bf16.msra.mxu1 %v1668_v11  ;;  %v1770_v32 = vld [vmem:[%s2921_s1 + $0x24] sm:$0xf]  ;;  %v1633_v33 = vld [vmem:[%s2921_s1 + $0x28] sm:$0xf0]  ;;  %v1632_v34 = vor.u32 %v1771_v31, %v1631_v30  ;;  %v1623_v36 = vld [vmem:[%s2921_s1 + $0x10] sm:$0xf]  ;;  %1353 = vmatpush.bf16.msra.mxu2 %v1789_v60 }
  0x1d   : > { %v1636_v35 = vor.u32 %v1770_v32, %v1633_v33  ;;  %v1769_v37 = vld [vmem:[%s2921_s1 + $0x14] sm:$0xf0]  ;;  %s2987_s17 = smov (!%p278_p11, %s1595_s17), 15  ;;  %v1768_v38 = vld [vmem:[%s2921_s1 + $0x14] sm:$0xf]  ;;  %v1787_v11 = vld [vmem:[%s2923_s3 + $0x28] sm:$0xff] }
  0x1e   : > { %v1625_v39 = vld [vmem:[%s2921_s1 + $0x18] sm:$0xf0]  ;;  %v1624_v40 = vor.u32 %v1769_v37, %v1623_v36  ;;  %v1615_v42 = vld [vmem:[%s2921_s1] sm:$0xf]  ;;  %v1767_v43 = vld [vmem:[%s2921_s1 + $0x4] sm:$0xf0] }
  0x1f   : > { %449 = vmatpush.bf16.msra.mxu0 %v1656_v16  ;;  %v1628_v41 = vor.u32 %v1768_v38, %v1625_v39  ;;  %s1596_s9 = sshll.u32 %s2987_s17, 2  ;;  %v1766_v44 = vld [vmem:[%s2921_s1 + $0x4] sm:$0xf]  ;;  %v1617_v45 = vld [vmem:[%s2921_s1 + $0x8] sm:$0xf0]  ;;  %v1616_v46 = vor.u32 %v1767_v43, %v1615_v42  ;;  %v1797_v61 = vld [vmem:[%s2923_s3 + $0x78] sm:$0xff] }
  0x20   : > { %478 = vmatpush.bf16.msra.mxu1 %v1660_v17  ;;  %s281_s16 = scalar_lea.vmem %s2920_s0, %s1596_s9  ;;  %v1620_v47 = vor.u32 %v1766_v44, %v1617_v45  ;;  %v337_v52 = vld [vmem:[%s2922_s2] sm:$0x3]  ;;  %1382 = vmatpush.bf16.msra.mxu3 %v1797_v61  ;;  %v1788_v1 = vld [vmem:[%s2923_s3 + $0x30] sm:$0xff]  ;;  %s274_s29 = sand.u32 1, %s1952_s19  }
  0x21   : > { %v1762_v48 = vld [vmem:[%s281_s16] sm:$0xff]  ;;  %v1763_v49 = vld [vmem:[%s281_s16 + $0x8] sm:$0xff]  ;;  %v1764_v50 = vld [vmem:[%s281_s16 + $0x10] sm:$0xff]  ;;  %v2160_v53 = vperm.slane %v337_v52, 0  ;;  %v2162_v54 = vperm.slane %v337_v52, 1  ;;  %1354 = vmatpush.bf16.msra.mxu2 %v1788_v1  ;;  %s1594_s7 = sshll.u32 %s274_s29, 6 }
  0x22   : > { %v1765_v51 = vld [vmem:[%s281_s16 + $0x18] sm:$0xff]  ;;  %v1796_v2 = vld [vmem:[%s2923_s3 + $0x70] sm:$0xff]  ;;  %v1786_v19 = vld [vmem:[%s2923_s3 + $0x20] sm:$0xff]  ;;  %s2871_s10 = scalar_lea.vmem [#allocation2], %s1594_s7  ;;  %s1798_s11 = sshll.u32 %s1960_s21, 6 }
  0x23   : > { %450 = vmatpush.bf16.msra.mxu0 %v1648_v22  ;;  %v1794_v20 = vld [vmem:[%s2923_s3 + $0x60] sm:$0xff]  ;;  %v1784_v42 = vld [vmem:[%s2923_s3 + $0x10] sm:$0xff]  ;;  %v1791_v1 = vld [vmem:[%s2923_s3 + $0x48] sm:$0xff]  ;;  %s1470_s14 = scalar_lea.hbm %s2925_s5, %s1798_s11  ;;  %s1471_s15 = sshll.u32 %s2871_s10, 4  ;;  %s1472_s15 = int_to_ptr.vmem [resolvable:$true] %s1471_s15 }
  0x24   : > { %479 = vmatpush.bf16.msra.mxu1 %v1652_v23  ;;  %1383 = vmatpush.bf16.msra.mxu3 %v1796_v2  ;;  %s1473_s16 = sshll.u32 %s1470_s14, 4  ;;  %s1459_s17 = scalar_lea.sflag [#allocation3], %s274_s29  ;;  %s1474_s16 = int_to_ptr.hbm [resolvable:$true] %s1473_s16 }
  0x25   : > { %1355 = vmatpush.bf16.msra.mxu2 %v1787_v11  ;;  %s1904_s24 = sshra.s32 %s1474_s16, 4  ;;  %s1910_s7 = scalar_lea.hbm %s2925_s5, 128  ;;  %s1905_s24 = int_to_ptr.hbm [resolvable:$true] %s1904_s24 }
  0x26   : > { %s1906_s21 = scalar_lea.hbm %s1905_s24, 64  ;;  %p1911_p1 = scmp.lt.s32.totalorder %s1905_s24, %s2925_s5 }
  0x27   : > { %451 = vmatpush.bf16.msra.mxu0 %v1640_v28  ;;  %p1907_p12 = scmp.ne.s32.totalorder %s1905_s24, %s1906_s21  ;;  %p1912_p2 = scmp.lt.s32.totalorder %s1910_s7, %s1906_s21 }
  0x28   : > { %480 = vmatpush.bf16.msra.mxu1 %v1644_v29  ;;  %1384 = vmatpush.bf16.msra.mxu3 %v1795_v15 }
  0x29   : > { %1356 = vmatpush.bf16.msra.mxu2 %v1786_v19  ;;  %p1908_p13 = pnand %p1907_p12, %p2042_p4  ;;  %p1913_p3 = por %p1912_p2, %p1911_p1 }
  0x2b   : > { %452 = vmatpush.bf16.msra.mxu0 %v1632_v34  ;;  %v1785_v34 = vld [vmem:[%s2923_s3 + $0x18] sm:$0xff]  ;;  %p1909_p0 = pneg %p1908_p13 }
  0x2c   : > { %481 = vmatpush.bf16.msra.mxu1 %v1636_v35  ;;  %1385 = vmatpush.bf16.msra.mxu3 %v1794_v20  ;;  %v1793_v35 = vld [vmem:[%s2923_s3 + $0x58] sm:$0xff] }
  0x2d   : > { %1357 = vmatpush.bf16.msra.mxu2 %v1785_v34  ;;  %p1914_p5 = pnand %p1913_p3, %p1909_p0 }
  0x2f   : > { %453 = vmatpush.bf16.msra.mxu0 %v1624_v40 }
  0x30   : > { %482 = vmatpush.bf16.msra.mxu1 %v1628_v41  ;;  %1386 = vmatpush.bf16.msra.mxu3 %v1793_v35 }
  0x31   : > { %1358 = vmatpush.bf16.msra.mxu2 %v1784_v42 }
  0x33   : > { %454 = vmatpush.bf16.msra.mxu0 %v1616_v46 }
  0x34   : > { %483 = vmatpush.bf16.msra.mxu1 %v1620_v47 }
  0x36   : > { %455 = vmatmul.bf16.vlgmr.msra.gmra.mxu0 %v1762_v48 }
  0x37   : > { %484 = vmatmul.bf16.vlgmr.msra.gmra.mxu1 %v1762_v48  ;;  %v1792_v48 = vld [vmem:[%s2923_s3 + $0x50] sm:$0xff] }
  0x38   : > { %1387 = vmatpush.bf16.msra.mxu3 %v1792_v48 }
  0x3c   : > { %1388 = vmatpush.bf16.msra.mxu3 %v1791_v1 }
  0x46   : > { %460 = vmatmul.bf16.gmra.mxu0 %v1763_v49 }
  0x47   : > { %489 = vmatmul.bf16.gmra.mxu1 %v1763_v49 }
  0x56   : > { %465 = vmatmul.bf16.gmra.mxu0 %v1764_v50 }
  0x57   : > { %494 = vmatmul.bf16.gmra.mxu1 %v1764_v50 }
  0x66   : > { %470 = vmatmul.bf16.gmra.mxu0 %v1765_v51 }
  0x67   : > { %499 = vmatmul.bf16.gmra.mxu1 %v1765_v51 }
  0xb3   : > { %v456_v55 = vpop.f32.mrf.mxu0 }
  0xb4   : > { %v2165_v56 = vadd.f32 %v456_v55, %v2160_v53  ;;  %v485_v57 = vpop.f32.mrf.mxu1 }
  0xb5   : > { %v2168_v58 = vadd.f32 %v485_v57, %v2162_v54 }
  0xb6   : > { %v2171_v59 = vmul.f32 0.70710677, %v2165_v56 }
  0xb7   : > { %v2180_v62 = vmul.f32 0.70710677, %v2168_v58  ;;  %v2312_v34 = vmul.f32 0.5, %v2168_v58 }
  0xb8   : > { %v537_v63 = vmul.f32 %v2171_v59, %v2171_v59 }
  0xb9   : > { %v577_v0 = vmul.f32 %v2180_v62, %v2180_v62 }
  0xba   : > { %v2192_v3 = vmin.f32 %v537_v63, 16.0 }
  0xbb   : > { %v458_v4 = vpop.f32.mrf.mxu0  ;;  %v2194_v5 = vmin.f32 %v577_v0, 16.0  ;;  %v1783_v0 = vld [vmem:[%s2923_s3 + $0x8] sm:$0xff] }
  0xbc   : > { %v2197_v6 = vadd.f32 %v458_v4, %v2160_v53  ;;  %v487_v7 = vpop.f32.mrf.mxu1  ;;  %v550_v12 = vmul.f32 3.8918573e-05, %v2192_v3  ;;  %v539_v13 = vmul.f32 2.1237322e-06, %v2192_v3  ;;  %1359 = vmatpush.bf16.msra.mxu2 %v1783_v0 }
  0xbd   : > { %v2200_v8 = vadd.f32 %v487_v7, %v2162_v54  ;;  %v579_v14 = vmul.f32 2.1237322e-06, %v2194_v5 }
  0xbe   : > { %v2203_v9 = vmul.f32 0.70710677, %v2197_v6  ;;  %v551_v21 = vadd.f32 0.001143296, %v550_v12  ;;  %v540_v22 = vadd.f32 0.00028619796, %v539_v13 }
  0xbf   : > { %v2206_v10 = vmul.f32 0.70710677, %v2200_v8  ;;  %v580_v23 = vadd.f32 0.00028619796, %v579_v14  ;;  %v2328_v42 = vmul.f32 0.5, %v2200_v8 }
  0xc0   : > { %v617_v16 = vmul.f32 %v2203_v9, %v2203_v9  ;;  %v552_v30 = vmul.f32 %v551_v21, %v2192_v3  ;;  %v541_v31 = vmul.f32 %v540_v22, %v2192_v3  ;;  %v1782_v22 = vld [vmem:[%s2923_s3] sm:$0xff] }
  0xc1   : > { %v657_v17 = vmul.f32 %v2206_v10, %v2206_v10  ;;  %v581_v32 = vmul.f32 %v580_v23, %v2194_v5  ;;  %v1790_v23 = vld [vmem:[%s2923_s3 + $0x40] sm:$0xff]  ;;  %1360 = vmatpush.bf16.msra.mxu2 %v1782_v22 }
  0xc2   : > { %v2230_v26 = vmin.f32 %v617_v16, 16.0  ;;  %v553_v43 = vadd.f32 0.014752088, %v552_v30  ;;  %v542_v44 = vadd.f32 0.0036580483, %v541_v31  ;;  %1389 = vmatpush.bf16.msra.mxu3 %v1790_v23 }
  0xc3   : > { %v461_v18 = vpop.f32.mrf.mxu0  ;;  %v2232_v27 = vmin.f32 %v657_v17, 16.0  ;;  %v582_v45 = vadd.f32 0.0036580483, %v581_v32 }
  0xc4   : > { %v2228_v24 = vadd.f32 %v461_v18, %v2160_v53  ;;  %v490_v25 = vpop.f32.mrf.mxu1  ;;  %v619_v36 = vmul.f32 2.1237322e-06, %v2230_v26  ;;  %v554_v60 = vmul.f32 %v553_v43, %v2192_v3  ;;  %v543_v61 = vmul.f32 %v542_v44, %v2192_v3 }
  0xc5   : > { %v2235_v28 = vadd.f32 %v490_v25, %v2162_v54  ;;  %v659_v37 = vmul.f32 2.1237322e-06, %v2232_v27  ;;  %v583_v63 = vmul.f32 %v582_v45, %v2194_v5  ;;  %v2307_v25 = vmul.f32 0.5, %v2165_v56 }
  0xc6   : > { %v2238_v29 = vmul.f32 0.70710677, %v2228_v24  ;;  %v620_v49 = vadd.f32 0.00028619796, %v619_v36  ;;  %v555_v16 = vadd.f32 0.112945676, %v554_v60 }
  0xc7   : > { %v2244_v33 = vmul.f32 0.70710677, %v2235_v28  ;;  %v660_v50 = vadd.f32 0.00028619796, %v659_v37  ;;  %v544_v17 = vadd.f32 0.05243302, %v543_v61 }
  0xc8   : > { %v697_v38 = vmul.f32 %v2238_v29, %v2238_v29  ;;  %v621_v2 = vmul.f32 %v620_v49, %v2230_v26  ;;  %v584_v18 = vadd.f32 0.05243302, %v583_v63 }
  0xc9   : > { %v737_v39 = vmul.f32 %v2244_v33, %v2244_v33  ;;  %v661_v4 = vmul.f32 %v660_v50, %v2232_v27  ;;  %v545_v58 = vmul.f32 %v544_v17, %v2192_v3 }
  0xca   : > { %v2258_v40 = vmin.f32 %v697_v38, 16.0  ;;  %v622_v30 = vadd.f32 0.0036580483, %v621_v2  ;;  %v2321_v38 = vmul.f32 0.5, %v2197_v6  ;;  %v585_v45 = vmul.f32 %v584_v18, %v2194_v5 }
  0xcb   : > { %v463_v41 = vpop.f32.mrf.mxu0  ;;  %v2263_v46 = vmin.f32 %v737_v39, 16.0  ;;  %v662_v31 = vadd.f32 0.0036580483, %v661_v4  ;;  %v546_v1 = vadd.f32 0.18741608, %v545_v58 }
  0xcc   : > { %v492_v47 = vpop.f32.mrf.mxu1  ;;  %v2269_v51 = vadd.f32 %v463_v41, %v2160_v53  ;;  %v699_v52 = vmul.f32 2.1237322e-06, %v2258_v40  ;;  %v556_v41 = vmul.f32 %v555_v16, %v2192_v3  ;;  %v623_v6 = vmul.f32 %v622_v30, %v2230_v26 }
  0xcd   : > { %v2273_v55 = vadd.f32 %v492_v47, %v2162_v54  ;;  %v739_v57 = vmul.f32 2.1237322e-06, %v2263_v46  ;;  %v663_v47 = vmul.f32 %v662_v31, %v2232_v27 }
  0xce   : > { %v2288_v7 = vmul.f32 0.70710677, %v2269_v51  ;;  %v700_v11 = vadd.f32 0.00028619796, %v699_v52  ;;  %v557_v0 = vadd.f32 0.4994258, %v556_v41 }
  0xcf   : > { %v2291_v12 = vmul.f32 0.70710677, %v2273_v55  ;;  %v740_v13 = vadd.f32 0.00028619796, %v739_v57  ;;  %v2343_v57 = vmul.f32 0.5, %v2228_v24 }
  0xd0   : > { %v777_v14 = vmul.f32 %v2288_v7, %v2288_v7  ;;  %v701_v35 = vmul.f32 %v700_v11, %v2258_v40  ;;  %v664_v17 = vadd.f32 0.05243302, %v663_v47  ;;  %v558_v31 = vmul.f32 %v557_v0, %v2192_v3 }
  0xd1   : > { %v817_v19 = vmul.f32 %v2291_v12, %v2291_v12  ;;  %v741_v56 = vmul.f32 %v740_v13, %v2263_v46 }
  0xd2   : > { %v2309_v32 = vmin.f32 %v777_v14, 16.0  ;;  %v702_v49 = vadd.f32 0.0036580483, %v701_v35  ;;  %v586_v14 = vadd.f32 0.18741608, %v585_v45  ;;  %v547_v35 = vmul.f32 %v546_v1, %v2192_v3 }
  0xd3   : > { %v466_v15 = vpop.f32.mrf.mxu0  ;;  %v2315_v36 = vmin.f32 %v817_v19, 16.0  ;;  %v742_v60 = vadd.f32 0.0036580483, %v741_v56  ;;  %v665_v47 = vmul.f32 %v664_v17, %v2232_v27 }
  0xd4   : > { %v2298_v20 = vadd.f32 %v466_v15, %v2160_v53  ;;  %v495_v21 = vpop.f32.mrf.mxu1  ;;  %v779_v39 = vmul.f32 2.1237322e-06, %v2309_v32  ;;  %v624_v15 = vadd.f32 0.05243302, %v623_v6  ;;  %v703_v18 = vmul.f32 %v702_v49, %v2258_v40 }
  0xd5   : > { %v2318_v37 = vadd.f32 %v495_v21, %v2162_v54  ;;  %v819_v43 = vmul.f32 2.1237322e-06, %v2315_v36  ;;  %v743_v22 = vmul.f32 %v742_v60, %v2263_v46  ;;  %v587_v58 = vmul.f32 %v586_v14, %v2194_v5 }
  0xd6   : > { %v2332_v44 = vmul.f32 0.70710677, %v2298_v20  ;;  %v780_v48 = vadd.f32 0.00028619796, %v779_v39  ;;  %v548_v14 = vadd.f32 1.1283791, %v547_v35 }
  0xd7   : > { %v820_v50 = vadd.f32 0.00028619796, %v819_v43  ;;  %v2340_v8 = vmul.f32 0.70710677, %v2318_v37  ;;  %v625_v43 = vmul.f32 %v624_v15, %v2230_v26  ;;  %v744_v3 = vadd.f32 0.05243302, %v743_v22 }
  0xd8   : > { %v857_v52 = vmul.f32 %v2332_v44, %v2332_v44  ;;  %v781_v61 = vmul.f32 %v780_v48, %v2309_v32  ;;  %v704_v48 = vadd.f32 0.05243302, %v703_v18  ;;  %v666_v35 = vadd.f32 0.18741608, %v665_v47 }
  0xd9   : > { %v821_v2 = vmul.f32 %v820_v50, %v2315_v36  ;;  %v897_v11 = vmul.f32 %v2340_v8, %v2340_v8  ;;  %v626_v18 = vadd.f32 0.18741608, %v625_v43 }
  0xda   : > { %v2347_v4 = vmin.f32 %v857_v52, 16.0  ;;  %v782_v16 = vadd.f32 0.0036580483, %v781_v61 }
  0xdb   : > { %v468_v63 = vpop.f32.mrf.mxu0  ;;  %v2356_v21 = vmin.f32 %v897_v11, 16.0  ;;  %v822_v56 = vadd.f32 0.0036580483, %v821_v2 }
  0xdc   : > { %v497_v13 = vpop.f32.mrf.mxu1  ;;  %v2352_v24 = vadd.f32 %v468_v63, %v2160_v53  ;;  %v859_v19 = vmul.f32 2.1237322e-06, %v2347_v4  ;;  %v783_v45 = vmul.f32 %v782_v16, %v2309_v32  ;;  %v2380_v63 = vadd.f32 1.0, %v558_v31 }
  0xdd   : > { %v2363_v30 = vadd.f32 %v497_v13, %v2162_v54  ;;  %v899_v41 = vmul.f32 2.1237322e-06, %v2356_v21  ;;  %v823_v0 = vmul.f32 %v822_v56, %v2315_v36 }
  0xde   : > { %v2360_v23 = vmul.f32 0.70710677, %v2352_v24  ;;  %v860_v39 = vadd.f32 0.00028619796, %v859_v19  ;;  %v784_v15 = vadd.f32 0.05243302, %v783_v45  ;;  %1858 = vrcp.f32 %v2380_v63 }
  0xdf   : > { %v900_v50 = vadd.f32 0.00028619796, %v899_v41  ;;  %v2378_v60 = vmul.f32 0.70710677, %v2363_v30  ;;  %v705_v45 = vmul.f32 %v704_v48, %v2258_v40  ;;  %v824_v43 = vadd.f32 0.05243302, %v823_v0 }
  0xe0   : > { %v937_v6 = vmul.f32 %v2360_v23, %v2360_v23  ;;  %v861_v49 = vmul.f32 %v860_v39, %v2347_v4  ;;  %v627_v0 = vmul.f32 %v626_v18, %v2230_v26  ;;  %vm565_vm1 = vweird.f32 %v2380_v63 }
  0xe1   : > { %v901_v2 = vmul.f32 %v900_v50, %v2356_v21  ;;  %v977_v17 = vmul.f32 %v2378_v60, %v2378_v60 }
  0xe2   : > { %v2375_v52 = vmin.f32 %v937_v6, 16.0  ;;  %v862_v1 = vadd.f32 0.0036580483, %v861_v49  ;;  %v745_v6 = vmul.f32 %v744_v3, %v2263_v46  ;;  %v785_v49 = vmul.f32 %v784_v15, %v2309_v32 }
  0xe3   : > { %v471_v61 = vpop.f32.mrf.mxu0  ;;  %v902_v22 = vadd.f32 0.0036580483, %v901_v2  ;;  %v2394_v39 = vmin.f32 %v977_v17, 16.0  ;;  %v2407_v2 = vmul.f32 0.5, %v2235_v28  ;;  %v588_v3 = vadd.f32 1.1283791, %v587_v58 }
  0xe4   : > { %v2385_v11 = vadd.f32 %v471_v61, %v2160_v53  ;;  %v500_v13 = vpop.f32.mrf.mxu1  ;;  %v939_v16 = vmul.f32 2.1237322e-06, %v2375_v52  ;;  %v863_v19 = vmul.f32 %v862_v1, %v2347_v4  ;;  %v667_v28 = vmul.f32 %v666_v35, %v2232_v27 }
  0xe5   : > { %v2392_v31 = vadd.f32 %v500_v13, %v2162_v54  ;;  %2937 = vst [vmem:[#allocation7_spill] sm:$0xff] %v2407_v2  ;;  %v903_v13 = vmul.f32 %v902_v22, %v2356_v21  ;;  %v979_v47 = vmul.f32 2.1237322e-06, %v2394_v39  ;;  %v825_v22 = vmul.f32 %v824_v43, %v2315_v36 }
  0xe6   : > { %2935 = vst [vmem:[#allocation5_spill] sm:$0xff] %v2385_v11  ;;  %v940_v56 = vadd.f32 0.00028619796, %v939_v16  ;;  %v2397_v41 = vmul.f32 0.70710677, %v2385_v11  ;;  %v2422_v11 = vpop.eup %1858  ;;  %v2434_v35 = vmul.f32 %v588_v3, %v2180_v62 }
  0xe7   : > { %2936 = vst [vmem:[#allocation6_spill] sm:$0xff] %v2392_v31  ;;  %v864_v50 = vadd.f32 0.05243302, %v863_v19  ;;  %v2412_v48 = vmul.f32 0.70710677, %v2392_v31  ;;  %v2418_v19 = vmul.f32 %v548_v14, %v2171_v59  ;;  %v2425_v31 = vmul.f32 0.5, %v2269_v51 }
  0xe8   : > { %v941_v61 = vmul.f32 %v940_v56, %v2375_v52  ;;  %v1017_v1 = vmul.f32 %v2397_v41, %v2397_v41  ;;  %v706_v56 = vadd.f32 0.18741608, %v705_v45  ;;  %v746_v2 = vadd.f32 0.18741608, %v745_v6 }
  0xe9   : > { %2938 = vst [vmem:[#allocation8_spill] sm:$0xff] %v2412_v48  ;;  %v786_v58 = vadd.f32 0.18741608, %v785_v49  ;;  %v865_v18 = vmul.f32 %v864_v50, %v2347_v4  ;;  %v1057_v59 = vmul.f32 %v2412_v48, %v2412_v48  ;;  %v628_v45 = vadd.f32 1.1283791, %v627_v0 }
  0xea   : > { %v942_v15 = vadd.f32 0.0036580483, %v941_v61  ;;  %v2415_v16 = vmin.f32 %v1017_v1, 16.0  ;;  %v904_v61 = vadd.f32 0.05243302, %v903_v13  ;;  %v707_v49 = vmul.f32 %v706_v56, %v2258_v40 }
  0xeb   : > { %v473_v17 = vpop.f32.mrf.mxu0  ;;  %v980_v1 = vadd.f32 0.00028619796, %v979_v47  ;;  %v668_v43 = vadd.f32 1.1283791, %v667_v28  ;;  %v826_v50 = vadd.f32 0.18741608, %v825_v22  ;;  %v561_v13 = vmul.f32 %v2422_v11, %v2380_v63 }
  0xec   : > { %v2431_v14 = vadd.f32 %v473_v17, %v2160_v53  ;;  %v943_v6 = vmul.f32 %v942_v15, %v2375_v52  ;;  %v1019_v51 = vmul.f32 2.1237322e-06, %v2415_v16  ;;  %v747_v47 = vmul.f32 %v746_v2, %v2263_v46 }
  0xed   : > { %v787_v53 = vmul.f32 %v786_v58, %v2309_v32  ;;  %v2444_v17 = vmul.f32 0.5, %v2273_v55  ;;  %v866_v62 = vadd.f32 0.18741608, %v865_v18  ;;  %v905_v3 = vmul.f32 %v904_v61, %v2356_v21 }
  0xee   : > { %2939 = vst [vmem:[#allocation9_spill] sm:$0xff] %v2431_v14  ;;  %v981_v0 = vmul.f32 %v980_v1, %v2394_v39  ;;  %v2448_v15 = vmin.f32 %v1057_v59, 16.0  ;;  %v2451_v28 = vmul.f32 0.70710677, %v2431_v14  ;;  %v2454_v56 = vmul.f32 %v628_v45, %v2203_v9  ;;  %v502_v9 = vpop.f32.mrf.mxu1 }
  0xef   : > { %2940 = vst [vmem:[#allocation10_spill] sm:$0xff] %v2444_v17  ;;  %v2457_v2 = vmul.f32 0.5, %v2298_v20  ;;  %v944_v22 = vadd.f32 0.05243302, %v943_v6  ;;  %v1020_v58 = vadd.f32 0.00028619796, %v1019_v51  ;;  %v2460_v55 = vmul.f32 %v668_v43, %v2206_v10 }
  0xf0   : > { %2941 = vst [vmem:[#allocation11_spill] sm:$0xff] %v2451_v28  ;;  %v708_v18 = vadd.f32 1.1283791, %v707_v49  ;;  %v827_v61 = vmul.f32 %v826_v50, %v2315_v36  ;;  %v562_v1 = vsub.f32 1.0, %v561_v13  ;;  %v748_v59 = vadd.f32 1.1283791, %v747_v47 }
  0xf1   : > { %v788_v48 = vadd.f32 1.1283791, %v787_v53  ;;  %v867_v14 = vmul.f32 %v866_v62, %v2347_v4  ;;  %v2465_v17 = vmul.f32 0.5, %v2318_v37  ;;  %v906_v45 = vadd.f32 0.18741608, %v905_v3 }
  0xf2   : > { %v982_v20 = vadd.f32 0.0036580483, %v981_v0  ;;  %v1059_v6 = vmul.f32 2.1237322e-06, %v2448_v15  ;;  %v1097_v10 = vmul.f32 %v2451_v28, %v2451_v28  ;;  %v945_v51 = vmul.f32 %v944_v22, %v2375_v52 }
  0xf3   : > { %2942 = vst [vmem:[#allocation12_spill] sm:$0xff] %v2465_v17  ;;  %v1021_v43 = vmul.f32 %v1020_v58, %v2415_v16  ;;  %v563_v49 = vmul.f32 %v2422_v11, %v562_v1  ;;  %v630_v50 = vmul.f32 3.8918573e-05, %v2230_v26  ;;  %v2475_v13 = vmul.f32 %v708_v18, %v2238_v29 }
  0xf4   : > { %v828_v37 = vadd.f32 1.1283791, %v827_v61  ;;  %v2478_v47 = vmul.f32 0.5, %v2352_v24  ;;  %v2481_v53 = vadd.f32 %v502_v9, %v2162_v54  ;;  %v2484_v62 = vmul.f32 %v748_v59, %v2244_v33 }
  0xf5   : > { %v2487_v3 = vmul.f32 %v788_v48, %v2288_v7  ;;  %v868_v0 = vadd.f32 1.1283791, %v867_v14  ;;  %v2490_v22 = vmul.f32 0.5, %v2363_v30  ;;  %v907_v29 = vmul.f32 %v906_v45, %v2356_v21 }
  0xf6   : > { %2943 = vst [vmem:[#allocation13_spill] sm:$0xff] %v2481_v53  ;;  %v983_v58 = vmul.f32 %v982_v20, %v2394_v39  ;;  %v1060_v18 = vadd.f32 0.00028619796, %v1059_v6  ;;  %v2494_v24 = vmin.f32 %v1097_v10, 16.0  ;;  %v946_v61 = vadd.f32 0.18741608, %v945_v51 }
  0xf7   : > { %2944 = vst [vmem:[#allocation14_spill] sm:$0xff] %v2490_v22  ;;  %v1022_v54 = vadd.f32 0.0036580483, %v1021_v43  ;;  %v564_v1 = vadd.f32 %v2422_v11, %v563_v49  ;;  %vm566_vm0 = vweird.f32 %v2422_v11  ;;  %v2499_v33 = vmul.f32 %v828_v37, %v2291_v12 }
  0xf8   : > { %v2502_v7 = vmul.f32 0.70710677, %v2481_v53  ;;  %v571_v30 = vand.u32 2147483648, %v2380_v63  ;;  %v631_v48 = vadd.f32 0.001143296, %v630_v50  ;;  %v2506_v14 = vmul.f32 %v868_v0, %v2332_v44  ;;  %vm2513_vm2 = vmor %vm565_vm1, %vm566_vm0 }
  0xf9   : > { %v569_v59 = vand.u32 2147483647, %v2380_v63  ;;  %v590_v9 = vmul.f32 3.8918573e-05, %v2194_v5  ;;  %v984_v45 = vadd.f32 0.05243302, %v983_v58  ;;  %v1061_v20 = vmul.f32 %v1060_v18, %v2448_v15 }
  0xfa   : > { %2945 = vst [vmem:[#allocation15_spill] sm:$0xff] %v2502_v7  ;;  %v1099_v12 = vmul.f32 2.1237322e-06, %v2494_v24  ;;  %v632_v10 = vmul.f32 %v631_v48, %v2230_v26  ;;  %v908_v51 = vadd.f32 1.1283791, %v907_v29  ;;  %v568_v44 = vsel %vm2513_vm2, %v2422_v11, %v564_v1 }
  0xfb   : > { %v591_v43 = vadd.f32 0.001143296, %v590_v9  ;;  %v670_v63 = vmul.f32 3.8918573e-05, %v2232_v27  ;;  %v947_v49 = vmul.f32 %v946_v61, %v2375_v52  ;;  %v1023_v50 = vmul.f32 %v1022_v54, %v2415_v16 }
  0xfc   : > { %v1137_v37 = vmul.f32 %v2502_v7, %v2502_v7  ;;  %v572_v0 = vor.u32 1.1754944e-38, %v571_v30  ;;  %vm570_vm3 = vcmp.eq.f32.partialorder %v569_v59, 8.507059e+37  ;;  %v633_v58 = vadd.f32 0.014752088, %v632_v10 }
  0xfd   : > { %v592_v18 = vmul.f32 %v591_v43, %v2194_v5  ;;  %v671_v29 = vadd.f32 0.001143296, %v670_v63  ;;  %v985_v48 = vmul.f32 %v984_v45, %v2394_v39  ;;  %v1062_v6 = vadd.f32 0.0036580483, %v1061_v20 }
  0xfe   : > { %v1100_v11 = vadd.f32 0.00028619796, %v1099_v12  ;;  %v573_v1 = vsel %vm570_vm3, %v572_v0, %v568_v44  ;;  %v634_v9 = vmul.f32 %v633_v58, %v2230_v26  ;;  %v710_v54 = vmul.f32 3.8918573e-05, %v2258_v40 }
  0xff   : > { %v593_v53 = vadd.f32 0.014752088, %v592_v18  ;;  %v672_v61 = vmul.f32 %v671_v29, %v2232_v27  ;;  %v2532_v7 = vmul.f32 %v908_v51, %v2340_v8  ;;  %v948_v30 = vadd.f32 1.1283791, %v947_v49 }
 0x100   : > { %v1024_v59 = vadd.f32 0.05243302, %v1023_v50  ;;  %v2534_v10 = vmin.f32 %v1137_v37, 16.0  ;;  %v635_v43 = vadd.f32 0.112945676, %v634_v9  ;;  %v1101_v63 = vmul.f32 %v1100_v11, %v2494_v24 }
 0x101   : > { %v594_v45 = vmul.f32 %v593_v53, %v2194_v5  ;;  %v673_v20 = vadd.f32 0.014752088, %v672_v61  ;;  %v711_v12 = vadd.f32 0.001143296, %v710_v54  ;;  %v986_v44 = vadd.f32 0.18741608, %v985_v48 }
 0x102   : > { %v574_v0 = vmul.f32 %v573_v1, %v2418_v19  ;;  %v790_v58 = vmul.f32 3.8918573e-05, %v2309_v32  ;;  %v636_v18 = vmul.f32 %v635_v43, %v2230_v26  ;;  %v1025_v50 = vmul.f32 %v1024_v59, %v2415_v16 }
 0x103   : > { %v595_v8 = vadd.f32 0.112945676, %v594_v45  ;;  %v674_v51 = vmul.f32 %v673_v20, %v2232_v27  ;;  %v712_v49 = vmul.f32 %v711_v12, %v2258_v40  ;;  %v1139_v53 = vmul.f32 2.1237322e-06, %v2534_v10 }
 0x104   : > { %v791_v37 = vadd.f32 0.001143296, %v790_v58  ;;  %v750_v29 = vmul.f32 3.8918573e-05, %v2263_v46  ;;  %v637_v48 = vadd.f32 0.4994258, %v636_v18  ;;  %v987_v58 = vmul.f32 %v986_v44, %v2394_v39 }
 0x105   : > { %v596_v11 = vmul.f32 %v595_v8, %v2194_v5  ;;  %v675_v19 = vadd.f32 0.112945676, %v674_v51  ;;  %v713_v1 = vadd.f32 0.014752088, %v712_v49  ;;  %v1102_v9 = vadd.f32 0.0036580483, %v1101_v63 }
 0x106   : > { %v1677_v61 = vclamps-f32 %v574_v0, 1.0  ;;  %v792_v54 = vmul.f32 %v791_v37, %v2309_v32  ;;  %v751_v43 = vadd.f32 0.001143296, %v750_v29  ;;  %v638_v45 = vmul.f32 %v637_v48, %v2230_v26 }
 0x107   : > { %v597_v20 = vadd.f32 0.4994258, %v596_v11  ;;  %v676_v59 = vmul.f32 %v675_v19, %v2232_v27  ;;  %v714_v12 = vmul.f32 %v713_v1, %v2258_v40  ;;  %v1063_v18 = vmul.f32 %v1062_v6, %v2448_v15 }
 0x108   : > { %v793_v28 = vadd.f32 0.014752088, %v792_v54  ;;  %v752_v8 = vmul.f32 %v751_v43, %v2263_v46  ;;  %v2554_v51 = vadd.f32 1.0, %v638_v45  ;;  %v1026_v37 = vadd.f32 0.18741608, %v1025_v50 }
 0x109   : > { %v598_v63 = vmul.f32 %v597_v20, %v2194_v5  ;;  %v677_v0 = vadd.f32 0.4994258, %v676_v59  ;;  %v715_v49 = vadd.f32 0.112945676, %v714_v12  ;;  %v830_v48 = vmul.f32 3.8918573e-05, %v2315_v36 }
 0x10a   : > { %v794_v26 = vmul.f32 %v793_v28, %v2309_v32  ;;  %v753_v29 = vadd.f32 0.014752088, %v752_v8  ;;  %v1103_v11 = vmul.f32 %v1102_v9, %v2494_v24  ;;  %v1140_v44 = vadd.f32 0.00028619796, %v1139_v53 }
 0x10b   : > { %1860 = vrcp.f32 %v2554_v51  ;;  %v1177_v6 = vadd.f32 1.0, %v1677_v61  ;;  %v2561_v19 = vadd.f32 1.0, %v598_v63  ;;  %v678_v1 = vmul.f32 %v677_v0, %v2232_v27 }
 0x10c   : > { %v716_v5 = vmul.f32 %v715_v49, %v2258_v40  ;;  %v795_v54 = vadd.f32 0.112945676, %v794_v26  ;;  %v2566_v50 = vmul.f32 %v948_v30, %v2360_v23  ;;  %v2568_v28 = vadd.f32 1.1283791, %v987_v58 }
 0x10d   : > { %v2570_v43 = vadd.f32 0.05243302, %v1063_v18  ;;  %v754_v9 = vmul.f32 %v753_v29, %v2263_v46  ;;  %v649_v53 = vand.u32 2147483647, %v2554_v51  ;;  %v651_v61 = vand.u32 2147483648, %v2554_v51 }
 0x10e   : > { %1862 = vrcp.f32 %v2561_v19  ;;  %v831_v45 = vadd.f32 0.001143296, %v830_v48  ;;  %v2576_v27 = vadd.f32 1.0, %v678_v1  ;;  %v717_v20 = vadd.f32 0.4994258, %v716_v5 }
 0x10f   : > { %2948 = vst [vmem:[#allocation16_spill] sm:$0xff] %v2570_v43  ;;  %v796_v59 = vmul.f32 %v795_v54, %v2309_v32  ;;  %v755_v23 = vadd.f32 0.112945676, %v754_v9  ;;  %v2580_v30 = vmul.f32 %v1026_v37, %v2415_v16  ;;  %v2582_v12 = vadd.f32 0.05243302, %v1103_v11 }
 0x110   : > { %v2585_v58 = vmul.f32 %v1140_v44, %v2534_v10  ;;  %v2588_v18 = vmul.f32 %v1177_v6, %v2307_v25  ;;  %vm645_vm4 = vweird.f32 %v2554_v51  ;;  %v609_v63 = vand.u32 2147483647, %v2561_v19 }
 0x111   : > { %v1861_v8 = vpop.eup %1860  ;;  %v611_v0 = vand.u32 2147483648, %v2561_v19  ;;  %1864 = vrcp.f32 %v2576_v27  ;;  %vm2595_vm5 = vcmp.eq.f32.partialorder %v649_v53, 8.507059e+37  ;;  %v718_v26 = vmul.f32 %v717_v20, %v2258_v40 }
 0x112   : > { %v641_v49 = vmul.f32 %v1861_v8, %v2554_v51  ;;  %v797_v29 = vadd.f32 0.4994258, %v796_v59  ;;  %v832_v25 = vmul.f32 %v831_v45, %v2315_v36  ;;  %v652_v48 = vor.u32 1.1754944e-38, %v651_v61 }
 0x113   : > { %vm605_vm6 = vweird.f32 %v2561_v19  ;;  %v689_v11 = vand.u32 2147483647, %v2576_v27  ;;  %v756_v44 = vmul.f32 %v755_v23, %v2263_v46  ;;  %v691_v5 = vand.u32 2147483648, %v2576_v27 }
 0x114   : > { %v1863_v6 = vpop.eup %1862  ;;  %v642_v1 = vsub.f32 1.0, %v641_v49  ;;  %v2605_v54 = vadd.f32 1.0, %v718_v26  ;;  %v798_v9 = vmul.f32 %v797_v29, %v2309_v32  ;;  %vm2609_vm7 = vcmp.eq.f32.partialorder %v609_v63, 8.507059e+37 }
 0x115   : > { %v601_v40 = vmul.f32 %v1863_v6, %v2561_v19  ;;  %v612_v61 = vor.u32 1.1754944e-38, %v611_v0  ;;  %v757_v45 = vadd.f32 0.4994258, %v756_v44  ;;  %v870_v20 = vmul.f32 3.8918573e-05, %v2347_v4 }
 0x116   : > { %v643_v59 = vmul.f32 %v1861_v8, %v642_v1  ;;  %vm646_vm8 = vweird.f32 %v1861_v8  ;;  %1866 = vrcp.f32 %v2605_v54  ;;  %v833_v23 = vadd.f32 0.014752088, %v832_v25 }
 0x117   : > { %v1865_v49 = vpop.eup %1864  ;;  %v602_v26 = vsub.f32 1.0, %v601_v40  ;;  %vm685_vm9 = vweird.f32 %v2576_v27  ;;  %v2616_v32 = vadd.f32 1.0, %v798_v9  ;;  %v758_v63 = vmul.f32 %v757_v45, %v2263_v46  ;;  %vm647_vm12 = vmor %vm645_vm4, %vm646_vm8 }
 0x118   : > { %v644_v29 = vadd.f32 %v1861_v8, %v643_v59  ;;  %vm606_vm10 = vweird.f32 %v1863_v6  ;;  %v681_v0 = vmul.f32 %v1865_v49, %v2576_v27  ;;  %vm2620_vm11 = vcmp.eq.f32.partialorder %v689_v11, 8.507059e+37 }
 0x119   : > { %v692_v1 = vor.u32 1.1754944e-38, %v691_v5  ;;  %v603_v25 = vmul.f32 %v1863_v6, %v602_v26  ;;  %v729_v40 = vand.u32 2147483647, %v2605_v54  ;;  %v731_v9 = vand.u32 2147483648, %v2605_v54  ;;  %vm607_vm14 = vmor %vm605_vm6, %vm606_vm10 }
 0x11a   : > { %1868 = vrcp.f32 %v2616_v32  ;;  %v648_v46 = vsel %vm647_vm12, %v1861_v8, %v644_v29  ;;  %v682_v45 = vsub.f32 1.0, %v681_v0  ;;  %v834_v59 = vmul.f32 %v833_v23, %v2315_v36 }
 0x11b   : > { %v871_v43 = vadd.f32 0.001143296, %v870_v20  ;;  %v653_v11 = vsel %vm2595_vm5, %v652_v48, %v648_v46  ;;  %v604_v22 = vadd.f32 %v1863_v6, %v603_v25  ;;  %vm725_vm13 = vweird.f32 %v2605_v54 }
 0x11c   : > { %v811_v51 = vand.u32 2147483648, %v2616_v32  ;;  %v2634_v5 = vadd.f32 1.0, %v758_v63  ;;  %v1867_v26 = vpop.eup %1866  ;;  %v654_v17 = vmul.f32 %v653_v11, %v2454_v56  ;;  %v683_v8 = vmul.f32 %v1865_v49, %v682_v45 }
 0x11d   : > { %vm686_vm15 = vweird.f32 %v1865_v49  ;;  %v809_v20 = vand.u32 2147483647, %v2616_v32  ;;  %v608_v37 = vsel %vm607_vm14, %v1863_v6, %v604_v22  ;;  %v721_v48 = vmul.f32 %v1867_v26, %v2605_v54 }
 0x11e   : > { %vm2642_vm0 = vcmp.eq.f32.partialorder %v729_v40, 8.507059e+37  ;;  %v732_v63 = vor.u32 1.1754944e-38, %v731_v9  ;;  %1870 = vrcp.f32 %v2634_v5  ;;  %v1679_v29 = vclamps-f32 %v654_v17, 1.0  ;;  %vm687_vm2 = vmor %vm685_vm9, %vm686_vm15 }
 0x11f   : > { %v613_v56 = vsel %vm2609_vm7, %v612_v61, %v608_v37  ;;  %v684_v19 = vadd.f32 %v1865_v49, %v683_v8  ;;  %vm805_vm1 = vweird.f32 %v2616_v32  ;;  %v722_v22 = vsub.f32 1.0, %v721_v48 }
 0x120   : > { %v1869_v0 = vpop.eup %1868  ;;  %v614_v25 = vmul.f32 %v613_v56, %v2434_v35  ;;  %v812_v6 = vor.u32 1.1754944e-38, %v811_v51  ;;  %v835_v40 = vadd.f32 0.112945676, %v834_v59  ;;  %v1179_v46 = vadd.f32 1.0, %v1679_v29 }
 0x121   : > { %v688_v9 = vsel %vm687_vm2, %v1865_v49, %v684_v19  ;;  %vm726_vm3 = vweird.f32 %v1867_v26  ;;  %v801_v17 = vmul.f32 %v1869_v0, %v2616_v32  ;;  %vm2654_vm4 = vcmp.eq.f32.partialorder %v809_v20, 8.507059e+37 }
 0x122   : > { %v1678_v61 = vclamps-f32 %v614_v25, 1.0  ;;  %v693_v45 = vsel %vm2620_vm11, %v692_v1, %v688_v9  ;;  %v723_v35 = vmul.f32 %v1867_v26, %v722_v22  ;;  %v769_v27 = vand.u32 2147483647, %v2634_v5  ;;  %vm727_vm7 = vmor %vm725_vm13, %vm726_vm3 }
 0x123   : > { %v1195_v11 = vmul.f32 %v1179_v46, %v2321_v38  ;;  %v694_v59 = vmul.f32 %v693_v45, %v2460_v55  ;;  %v802_v51 = vsub.f32 1.0, %v801_v17  ;;  %vm806_vm5 = vweird.f32 %v1869_v0 }
 0x124   : > { %vm765_vm6 = vweird.f32 %v2634_v5  ;;  %v1871_v49 = vpop.eup %1870  ;;  %v1178_v8 = vadd.f32 1.0, %v1678_v61  ;;  %v724_v20 = vadd.f32 %v1867_v26, %v723_v35  ;;  %v836_v37 = vmul.f32 %v835_v40, %v2315_v36  ;;  %vm807_vm8 = vmor %vm805_vm1, %vm806_vm5 }
 0x125   : > { %v872_v48 = vmul.f32 %v871_v43, %v2347_v4  ;;  %v1217_v44 = vpack.c.bf16 %v1195_v11, %v2588_v18  ;;  %v1680_v1 = vclamps-f32 %v694_v59, 1.0  ;;  %v803_v38 = vmul.f32 %v1869_v0, %v802_v51 }
 0x126   : > { %v761_v55 = vmul.f32 %v1871_v49, %v2634_v5  ;;  %v1194_v29 = vmul.f32 %v1178_v8, %v2312_v34  ;;  %v728_v56 = vsel %vm727_vm7, %v1867_v26, %v724_v20  ;;  %v771_v19 = vand.u32 2147483648, %v2634_v5 }
 0x127   : > { %v837_v25 = vadd.f32 0.4994258, %v836_v37  ;;  %1361 = vmatmul.bf16.vlgmr.msra.gmra.mxu2 %v1217_v44  ;;  %v1180_v22 = vadd.f32 1.0, %v1680_v1  ;;  %v733_v43 = vsel %vm2642_vm0, %v732_v63, %v728_v56  ;;  %v804_v18 = vadd.f32 %v1869_v0, %v803_v38 }
 0x128   : > { %v762_v40 = vsub.f32 1.0, %v761_v55  ;;  %v734_v46 = vmul.f32 %v733_v43, %v2475_v13  ;;  %v873_v34 = vadd.f32 0.014752088, %v872_v48  ;;  %v950_v26 = vmul.f32 3.8918573e-05, %v2375_v52 }
 0x129   : > { %v838_v54 = vmul.f32 %v837_v25, %v2315_v36  ;;  %v1196_v9 = vmul.f32 %v1180_v22, %v2328_v42  ;;  %v808_v17 = vsel %vm807_vm8, %v1869_v0, %v804_v18  ;;  %vm766_vm9 = vweird.f32 %v1871_v49 }
 0x12a   : > { %v763_v61 = vmul.f32 %v1871_v49, %v762_v40  ;;  %v1681_v23 = vclamps-f32 %v734_v46, 1.0  ;;  %v813_v63 = vsel %vm2654_vm4, %v812_v6, %v808_v17  ;;  %v874_v13 = vmul.f32 %v873_v34, %v2347_v4  ;;  %vm767_vm10 = vmor %vm765_vm6, %vm766_vm9 }
 0x12b   : > { %v2684_v45 = vadd.f32 1.0, %v838_v54  ;;  %v1218_v32 = vpack.c.bf16 %v1196_v9, %v1194_v29  ;;  %v814_v35 = vmul.f32 %v813_v63, %v2487_v3  ;;  %v951_v11 = vadd.f32 0.001143296, %v950_v26 }
 0x12c   : > { %v764_v36 = vadd.f32 %v1871_v49, %v763_v61  ;;  %v1181_v59 = vadd.f32 1.0, %v1681_v23  ;;  %v772_v42 = vor.u32 1.1754944e-38, %v771_v19  ;;  %v910_v0 = vmul.f32 3.8918573e-05, %v2356_v21 }
 0x12d   : > { %1872 = vrcp.f32 %v2684_v45  ;;  %1390 = vmatmul.bf16.vlgmr.msra.gmra.mxu3 %v1218_v32  ;;  %v1683_v6 = vclamps-f32 %v814_v35, 1.0  ;;  %vm770_vm11 = vcmp.eq.f32.partialorder %v769_v27, 8.507059e+37  ;;  %v875_v51 = vadd.f32 0.112945676, %v874_v13 }
 0x12e   : > { %v768_v53 = vsel %vm767_vm10, %v1871_v49, %v764_v36  ;;  %v2694_v8 = vmul.f32 %v2568_v28, %v2378_v60  ;;  %v2697_v3 = vadd.f32 1.1283791, %v2580_v30  ;;  %v952_v5 = vmul.f32 %v951_v11, %v2375_v52 }
 0x12f   : > { %v773_v20 = vsel %vm770_vm11, %v772_v42, %v768_v53  ;;  %v1105_v37 = vmul.f32 %v2582_v12, %v2494_v24  ;;  %v2703_v48 = vadd.f32 0.0036580483, %v2585_v58  ;;  %v1183_v44 = vadd.f32 1.0, %v1683_v6 }
 0x130   : > { %v876_v27 = vmul.f32 %v875_v51, %v2347_v4  ;;  %v1197_v49 = vmul.f32 %v1181_v59, %v2343_v57  ;;  %v953_v1 = vadd.f32 0.014752088, %v952_v5  ;;  %v911_v60 = vadd.f32 0.001143296, %v910_v0 }
 0x131   : > { %v990_v28 = vmul.f32 3.8918573e-05, %v2394_v39  ;;  %v1199_v30 = vmul.f32 %v1183_v44, %v2425_v31  ;;  %v774_v38 = vmul.f32 %v773_v20, %v2484_v62  ;;  %v1030_v29 = vmul.f32 3.8918573e-05, %v2415_v16 }
 0x132   : > { %v877_v55 = vadd.f32 0.4994258, %v876_v27  ;;  %v954_v58 = vmul.f32 %v953_v1, %v2375_v52  ;;  %v912_v56 = vmul.f32 %v911_v60, %v2356_v21  ;;  %v1110_v25 = vmul.f32 3.8918573e-05, %v2494_v24 }
 0x133   : > { %v1873_v12 = vpop.eup %1872  ;;  %v991_v19 = vadd.f32 0.001143296, %v990_v28  ;;  %v1219_v57 = vpack.c.bf16 %v1199_v30, %v1197_v49  ;;  %v849_v43 = vand.u32 2147483647, %v2684_v45  ;;  %v851_v31 = vand.u32 2147483648, %v2684_v45 }
 0x134   : > { %v841_v22 = vmul.f32 %v1873_v12, %v2684_v45  ;;  %v878_v62 = vmul.f32 %v877_v55, %v2347_v4  ;;  %v955_v18 = vadd.f32 0.112945676, %v954_v58  ;;  %v913_v40 = vadd.f32 0.014752088, %v912_v56 }
 0x135   : > { %v992_v46 = vmul.f32 %v991_v19, %v2394_v39  ;;  %v1682_v54 = vclamps-f32 %v774_v38, 1.0  ;;  %v1031_v26 = vadd.f32 0.001143296, %v1030_v29  ;;  %v1111_v9 = vadd.f32 0.001143296, %v1110_v25  ;;  %v2959_v19 = vld [vmem:[#allocation7_spill] sm:$0xff] }
 0x136   : > { %v842_v34 = vsub.f32 1.0, %v841_v22  ;;  %v2719_v17 = vadd.f32 1.0, %v878_v62  ;;  %v956_v61 = vmul.f32 %v955_v18, %v2375_v52  ;;  %v914_v23 = vmul.f32 %v913_v40, %v2356_v21 }
 0x137   : > { %v993_v63 = vadd.f32 0.014752088, %v992_v46  ;;  %1366 = vmatmul.bf16.gmra.mxu2 %v1219_v57  ;;  %vm846_vm12 = vweird.f32 %v1873_v12  ;;  %v1032_v4 = vmul.f32 %v1031_v26, %v2415_v16  ;;  %v1112_v32 = vmul.f32 %v1111_v9, %v2494_v24 }
 0x138   : > { %v843_v13 = vmul.f32 %v1873_v12, %v842_v34  ;;  %v1106_v35 = vadd.f32 0.18741608, %v1105_v37  ;;  %vm845_vm13 = vweird.f32 %v2684_v45  ;;  %vm850_vm14 = vcmp.eq.f32.partialorder %v849_v43, 8.507059e+37 }
 0x139   : > { %1874 = vrcp.f32 %v2719_v17  ;;  %v957_v11 = vadd.f32 0.4994258, %v956_v61  ;;  %v915_v59 = vadd.f32 0.112945676, %v914_v23  ;;  %v994_v42 = vmul.f32 %v993_v63, %v2394_v39  ;;  %vm847_vm15 = vmor %vm845_vm13, %vm846_vm12 }
 0x13a   : > { %v844_v36 = vadd.f32 %v1873_v12, %v843_v13  ;;  %v852_v0 = vor.u32 1.1754944e-38, %v851_v31  ;;  %v1182_v6 = vadd.f32 1.0, %v1682_v54  ;;  %v1033_v53 = vadd.f32 0.014752088, %v1032_v4  ;;  %v2962_v54 = vld [vmem:[#allocation10_spill] sm:$0xff] }
 0x13b   : > { %v1113_v51 = vadd.f32 0.014752088, %v1112_v32  ;;  %v958_v5 = vmul.f32 %v957_v11, %v2375_v52  ;;  %v916_v37 = vmul.f32 %v915_v59, %v2356_v21  ;;  %v995_v44 = vadd.f32 0.112945676, %v994_v42 }
 0x13c   : > { %v848_v20 = vsel %vm847_vm15, %v1873_v12, %v844_v36  ;;  %v1034_v27 = vmul.f32 %v1033_v53, %v2415_v16  ;;  %v1070_v1 = vmul.f32 3.8918573e-05, %v2448_v15  ;;  %v2739_v52 = vmul.f32 %v2697_v3, %v2397_v41 }
 0x13d   : > { %v853_v45 = vsel %vm850_vm14, %v852_v0, %v848_v20  ;;  %v1114_v49 = vmul.f32 %v1113_v51, %v2494_v24  ;;  %v2734_v28 = vadd.f32 1.0, %v958_v5  ;;  %v917_v30 = vadd.f32 0.4994258, %v916_v37 }
 0x13e   : > { %v854_v60 = vmul.f32 %v853_v45, %v2499_v33  ;;  %v996_v38 = vmul.f32 %v995_v44, %v2394_v39  ;;  %v2742_v29 = vmul.f32 %v1106_v35, %v2494_v24  ;;  %v889_v12 = vand.u32 2147483647, %v2719_v17 }
 0x13f   : > { %v1875_v55 = vpop.eup %1874  ;;  %v1035_v58 = vadd.f32 0.112945676, %v1034_v27  ;;  %v1198_v25 = vmul.f32 %v1182_v6, %v2959_v19  ;;  %1876 = vrcp.f32 %v2734_v28  ;;  %v891_v57 = vand.u32 2147483648, %v2719_v17 }
 0x140   : > { %v1684_v56 = vclamps-f32 %v854_v60, 1.0  ;;  %v881_v33 = vmul.f32 %v1875_v55, %v2719_v17  ;;  %v918_v22 = vmul.f32 %v917_v30, %v2356_v21  ;;  %v1115_v43 = vadd.f32 0.112945676, %v1114_v49 }
 0x141   : > { %v1071_v41 = vadd.f32 0.001143296, %v1070_v1  ;;  %v997_v62 = vadd.f32 0.4994258, %v996_v38  ;;  %v1036_v18 = vmul.f32 %v1035_v58, %v2415_v16  ;;  %vm885_vm0 = vweird.f32 %v2719_v17 }
 0x142   : > { %v1184_v3 = vadd.f32 1.0, %v1684_v56  ;;  %v882_v31 = vsub.f32 1.0, %v881_v33  ;;  %vm886_vm1 = vweird.f32 %v1875_v55  ;;  %vm2752_vm2 = vcmp.eq.f32.partialorder %v889_v12, 8.507059e+37 }
 0x143   : > { %v2756_v46 = vadd.f32 1.0, %v918_v22  ;;  %v998_v21 = vmul.f32 %v997_v62, %v2394_v39  ;;  %v1037_v9 = vadd.f32 0.4994258, %v1036_v18  ;;  %v892_v61 = vor.u32 1.1754944e-38, %v891_v57  ;;  %vm887_vm3 = vmor %vm885_vm0, %vm886_vm1  ;;  %v2971_v22 = vld [vmem:[#allocation16_spill] sm:$0xff] }
 0x144   : > { %v1200_v34 = vmul.f32 %v1184_v3, %v2962_v54  ;;  %v883_v26 = vmul.f32 %v1875_v55, %v882_v31  ;;  %v1116_v23 = vmul.f32 %v1115_v43, %v2494_v24  ;;  %v1072_v63 = vmul.f32 %v1071_v41, %v2448_v15 }
 0x145   : > { %1878 = vrcp.f32 %v2756_v46  ;;  %v1877_v13 = vpop.eup %1876  ;;  %v2763_v35 = vadd.f32 1.0, %v998_v21  ;;  %v1038_v36 = vmul.f32 %v1037_v9, %v2415_v16  ;;  %vm965_vm4 = vweird.f32 %v2734_v28 }
 0x146   : > { %v1220_v4 = vpack.c.bf16 %v1200_v34, %v1198_v25  ;;  %v884_v32 = vadd.f32 %v1875_v55, %v883_v26  ;;  %v961_v39 = vmul.f32 %v1877_v13, %v2734_v28  ;;  %v969_v11 = vand.u32 2147483647, %v2734_v28 }
 0x147   : > { %v1150_v59 = vmul.f32 3.8918573e-05, %v2534_v10  ;;  %v971_v0 = vand.u32 2147483648, %v2734_v28  ;;  %v929_v6 = vand.u32 2147483647, %v2756_v46  ;;  %1880 = vrcp.f32 %v2763_v35 }
 0x148   : > { %1395 = vmatmul.bf16.gmra.mxu3 %v1220_v4  ;;  %v888_v42 = vsel %vm887_vm3, %v1875_v55, %v884_v32  ;;  %v962_v17 = vsub.f32 1.0, %v961_v39  ;;  %v931_v53 = vand.u32 2147483648, %v2756_v46  ;;  %v2779_v51 = vadd.f32 1.0, %v1038_v36 }
 0x149   : > { %v893_v16 = vsel %vm2752_vm2, %v892_v61, %v888_v42  ;;  %vm966_vm5 = vweird.f32 %v1877_v13  ;;  %v1117_v5 = vadd.f32 0.4994258, %v1116_v23  ;;  %v1073_v37 = vadd.f32 0.014752088, %v1072_v63 }
 0x14a   : > { %v894_v20 = vmul.f32 %v893_v16, %v2506_v14  ;;  %v963_v45 = vmul.f32 %v1877_v13, %v962_v17  ;;  %v1009_v27 = vand.u32 2147483647, %v2763_v35  ;;  %v1011_v49 = vand.u32 2147483648, %v2763_v35  ;;  %vm967_vm9 = vmor %vm965_vm4, %vm966_vm5 }
 0x14b   : > { %v1879_v44 = vpop.eup %1878  ;;  %1882 = vrcp.f32 %v2779_v51  ;;  %vm2785_vm6 = vcmp.eq.f32.partialorder %v969_v11, 8.507059e+37  ;;  %v972_v60 = vor.u32 1.1754944e-38, %v971_v0  ;;  %vm925_vm7 = vweird.f32 %v2756_v46 }
 0x14c   : > { %v921_v30 = vmul.f32 %v1879_v44, %v2756_v46  ;;  %v964_v14 = vadd.f32 %v1877_v13, %v963_v45  ;;  %vm2791_vm8 = vcmp.eq.f32.partialorder %v929_v6, 8.507059e+37  ;;  %v1118_v55 = vmul.f32 %v1117_v5, %v2494_v24 }
 0x14d   : > { %v1074_v12 = vmul.f32 %v1073_v37, %v2448_v15  ;;  %v1881_v58 = vpop.eup %1880  ;;  %v1685_v56 = vclamps-f32 %v894_v20, 1.0  ;;  %v932_v25 = vor.u32 1.1754944e-38, %v931_v53  ;;  %vm1005_vm10 = vweird.f32 %v2763_v35 }
 0x14e   : > { %v922_v19 = vsub.f32 1.0, %v921_v30  ;;  %v968_v33 = vsel %vm967_vm9, %v1877_v13, %v964_v14  ;;  %v1001_v57 = vmul.f32 %v1881_v58, %v2763_v35  ;;  %vm2802_vm11 = vcmp.eq.f32.partialorder %v1009_v27, 8.507059e+37 }
 0x14f   : > { %v1012_v24 = vor.u32 1.1754944e-38, %v1011_v49  ;;  %v1151_v43 = vadd.f32 0.001143296, %v1150_v59  ;;  %v973_v41 = vsel %vm2785_vm6, %v972_v60, %v968_v33  ;;  %vm926_vm12 = vweird.f32 %v1879_v44  ;;  %v2970_v33 = vld [vmem:[#allocation14_spill] sm:$0xff] }
 0x150   : > { %v923_v3 = vmul.f32 %v1879_v44, %v922_v19  ;;  %v2808_v28 = vadd.f32 1.0, %v1118_v55  ;;  %v974_v62 = vmul.f32 %v973_v41, %v2566_v50  ;;  %v1002_v18 = vsub.f32 1.0, %v1001_v57  ;;  %vm927_vm14 = vmor %vm925_vm7, %vm926_vm12  ;;  %v2969_v19 = vld [vmem:[#allocation12_spill] sm:$0xff] }
 0x151   : > { %v1883_v31 = vpop.eup %1882  ;;  %vm1045_vm13 = vweird.f32 %v2779_v51  ;;  %v1075_v40 = vadd.f32 0.112945676, %v1074_v12  ;;  %v1185_v54 = vadd.f32 1.0, %v1685_v56  ;;  %vm1006_vm15 = vweird.f32 %v1881_v58 }
 0x152   : > { %v924_v34 = vadd.f32 %v1879_v44, %v923_v3  ;;  %v1041_v26 = vmul.f32 %v1883_v31, %v2779_v51  ;;  %1884 = vrcp.f32 %v2808_v28  ;;  %v1687_v21 = vclamps-f32 %v974_v62, 1.0  ;;  %vm1007_vm0 = vmor %vm1005_vm10, %vm1006_vm15 }
 0x153   : > { %v1003_v9 = vmul.f32 %v1881_v58, %v1002_v18  ;;  %v1152_v61 = vmul.f32 %v1151_v43, %v2534_v10  ;;  %v1049_v63 = vand.u32 2147483647, %v2779_v51  ;;  %v1076_v13 = vmul.f32 %v1075_v40, %v2448_v15  ;;  %v2972_v43 = vld [vmem:[#allocation11_spill] sm:$0xff] }
 0x154   : > { %v928_v23 = vsel %vm927_vm14, %v1879_v44, %v924_v34  ;;  %v1042_v50 = vsub.f32 1.0, %v1041_v26  ;;  %v1187_v4 = vadd.f32 1.0, %v1687_v21  ;;  %v1051_v39 = vand.u32 2147483648, %v2779_v51 }
 0x155   : > { %v933_v32 = vsel %vm2791_vm8, %v932_v25, %v928_v23  ;;  %v1004_v36 = vadd.f32 %v1881_v58, %v1003_v9  ;;  %vm1046_vm1 = vweird.f32 %v1883_v31  ;;  %v1077_v59 = vadd.f32 0.4994258, %v1076_v13 }
 0x156   : > { %v934_v46 = vmul.f32 %v933_v32, %v2532_v7  ;;  %v1043_v11 = vmul.f32 %v1883_v31, %v1042_v50  ;;  %v1201_v42 = vmul.f32 %v1185_v54, %v2457_v2  ;;  %v1203_v0 = vmul.f32 %v1187_v4, %v2478_v47  ;;  %vm1047_vm2 = vmor %vm1045_vm13, %vm1046_vm1  ;;  %v2973_v4 = vld [vmem:[#allocation5_spill] sm:$0xff] }
 0x157   : > { %v1008_v6 = vsel %vm1007_vm0, %v1881_v58, %v1004_v36  ;;  %v1153_v16 = vadd.f32 0.014752088, %v1152_v61  ;;  %v1078_v7 = vmul.f32 %v1077_v59, %v2448_v15  ;;  %v1052_v44 = vor.u32 1.1754944e-38, %v1051_v39  ;;  %v2974_v36 = vld [vmem:[#allocation9_spill] sm:$0xff] }
 0x158   : > { %v1885_v17 = vpop.eup %1884  ;;  %v1686_v53 = vclamps-f32 %v934_v46, 1.0  ;;  %v1013_v20 = vsel %vm2802_vm11, %v1012_v24, %v1008_v6  ;;  %v1044_v5 = vadd.f32 %v1883_v31, %v1043_v11  ;;  %v1221_v37 = vpack.c.bf16 %v1203_v0, %v1201_v42 }
 0x159   : > { %v1014_v35 = vmul.f32 %v1013_v20, %v2694_v8  ;;  %v1121_v2 = vmul.f32 %v1885_v17, %v2808_v28  ;;  %vm1050_vm3 = vcmp.eq.f32.partialorder %v1049_v63, 8.507059e+37  ;;  %v2834_v45 = vadd.f32 1.0, %v1078_v7 }
 0x15a   : > { %v1048_v47 = vsel %vm1047_vm2, %v1883_v31, %v1044_v5  ;;  %v1154_v27 = vmul.f32 %v1153_v16, %v2534_v10  ;;  %1371 = vmatmul.bf16.gmra.mxu2 %v1221_v37  ;;  %v1186_v1 = vadd.f32 1.0, %v1686_v53  ;;  %v1108_v14 = vadd.f32 1.1283791, %v2742_v29 }
 0x15b   : > { %v1688_v49 = vclamps-f32 %v1014_v35, 1.0  ;;  %v1053_v60 = vsel %vm1050_vm3, %v1052_v44, %v1048_v47  ;;  %v1122_v30 = vsub.f32 1.0, %v1121_v2  ;;  %v1129_v8 = vand.u32 2147483647, %v2808_v28  ;;  %v2975_v47 = vld [vmem:[#allocation8_spill] sm:$0xff] }
 0x15c   : > { %v1131_v51 = vand.u32 2147483648, %v2808_v28  ;;  %1886 = vrcp.f32 %v2834_v45  ;;  %v1054_v55 = vmul.f32 %v1053_v60, %v2739_v52  ;;  %vm1126_vm4 = vweird.f32 %v1885_v17 }
 0x15d   : > { %v1188_v38 = vadd.f32 1.0, %v1688_v49  ;;  %v1123_v12 = vmul.f32 %v1885_v17, %v1122_v30  ;;  %v1143_v58 = vmul.f32 %v2703_v48, %v2534_v10  ;;  %v1155_v56 = vadd.f32 0.112945676, %v1154_v27 }
 0x15e   : > { %v1202_v25 = vmul.f32 %v1186_v1, %v2969_v19  ;;  %vm1125_vm5 = vweird.f32 %v2808_v28  ;;  %v1065_v24 = vmul.f32 %v2971_v22, %v2448_v15  ;;  %v1109_v41 = vmul.f32 %v1108_v14, %v2972_v43 }
 0x15f   : > { %v1204_v57 = vmul.f32 %v1188_v38, %v2970_v33  ;;  %v1124_v29 = vadd.f32 %v1885_v17, %v1123_v12  ;;  %vm1127_vm6 = vmor %vm1125_vm5, %vm1126_vm4  ;;  %v1132_v52 = vor.u32 1.1754944e-38, %v1131_v51  ;;  %v1156_v3 = vmul.f32 %v1155_v56, %v2534_v10  ;;  %v2976_v38 = vld [vmem:[#allocation15_spill] sm:$0xff]  ;;  %v2977_v33 = vld [vmem:[#allocation6_spill] sm:$0xff] }
 0x160   : > { %v1689_v62 = vclamps-f32 %v1054_v55, 1.0  ;;  %vm1130_vm7 = vcmp.eq.f32.partialorder %v1129_v8, 8.507059e+37  ;;  %v1144_v40 = vadd.f32 0.05243302, %v1143_v58  ;;  %v1066_v21 = vadd.f32 0.18741608, %v1065_v24 }
 0x161   : > { %v1222_v31 = vpack.c.bf16 %v1204_v57, %v1202_v25  ;;  %v1128_v48 = vsel %vm1127_vm6, %v1885_v17, %v1124_v29  ;;  %v1157_v34 = vadd.f32 0.4994258, %v1156_v3  ;;  %v517_v32 = vmul.f32 0.5, %v2973_v4  ;;  %v2978_v29 = vld [vmem:[#allocation13_spill] sm:$0xff] }
 0x162   : > { %v1887_v18 = vpop.eup %1886  ;;  %v1133_v54 = vsel %vm1130_vm7, %v1132_v52, %v1128_v48  ;;  %v1189_v23 = vadd.f32 1.0, %v1689_v62  ;;  %v1145_v63 = vmul.f32 %v1144_v40, %v2534_v10  ;;  %v519_v39 = vmul.f32 0.5, %v2974_v36  ;;  %v1857_v48 = vld [vmem:[%s2924_s4] ss:$0 sm:$0xff] }
 0x163   : > { %1400 = vmatmul.bf16.gmra.mxu3 %v1222_v31  ;;  %v1134_v26 = vmul.f32 %v1133_v54, %v1109_v41  ;;  %v1081_v28 = vmul.f32 %v1887_v18, %v2834_v45  ;;  %v1158_v9 = vmul.f32 %v1157_v34, %v2534_v10  ;;  %v1067_v59 = vmul.f32 %v1066_v21, %v2448_v15 }
 0x164   : > { %v1205_v42 = vmul.f32 %v1189_v23, %v517_v32  ;;  %vm1086_vm8 = vweird.f32 %v1887_v18  ;;  %v1146_v16 = vadd.f32 0.18741608, %v1145_v63  ;;  %v1091_v17 = vand.u32 2147483648, %v2834_v45 }
 0x165   : > { %v1691_v61 = vclamps-f32 %v1134_v26, 1.0  ;;  %v1082_v50 = vsub.f32 1.0, %v1081_v28  ;;  %v1159_v13 = vadd.f32 1.0, %v1158_v9  ;;  %vm1085_vm9 = vweird.f32 %v2834_v45 }
 0x166   : > { %v1089_v20 = vand.u32 2147483647, %v2834_v45  ;;  %vm1087_vm10 = vmor %vm1085_vm9, %vm1086_vm8  ;;  %v1068_v5 = vadd.f32 1.1283791, %v1067_v59  ;;  %v1147_v15 = vmul.f32 %v1146_v16, %v2534_v10  ;;  %v1092_v35 = vor.u32 1.1754944e-38, %v1091_v17 }
 0x167   : > { %v1191_v46 = vadd.f32 1.0, %v1691_v61  ;;  %v1083_v11 = vmul.f32 %v1887_v18, %v1082_v50  ;;  %1888 = vrcp.f32 %v1159_v13  ;;  %v1171_v60 = vand.u32 2147483648, %v1159_v13 }
 0x168   : > { %vm1090_vm11 = vcmp.eq.f32.partialorder %v1089_v20, 8.507059e+37  ;;  %v1069_v27 = vmul.f32 %v1068_v5, %v2975_v47  ;;  %v1148_v1 = vadd.f32 1.1283791, %v1147_v15  ;;  %v1169_v45 = vand.u32 2147483647, %v1159_v13 }
 0x169   : > { %v1207_v0 = vmul.f32 %v1191_v46, %v519_v39  ;;  %v1084_v6 = vadd.f32 %v1887_v18, %v1083_v11  ;;  %vm1165_vm13 = vweird.f32 %v1159_v13  ;;  %v1172_v51 = vor.u32 1.1754944e-38, %v1171_v60 }
 0x16a   : > { %v1149_v55 = vmul.f32 %v1148_v1, %v2976_v38  ;;  %vm1170_vm15 = vcmp.eq.f32.partialorder %v1169_v45, 8.507059e+37  ;;  %v518_v57 = vmul.f32 0.5, %v2977_v33  ;;  %v520_v22 = vmul.f32 0.5, %v2978_v29 }
 0x16b   : > { %v1223_v53 = vpack.c.bf16 %v1207_v0, %v1205_v42  ;;  %v1088_v7 = vsel %vm1087_vm10, %v1887_v18, %v1084_v6 }
 0x16c   : > { %v1093_v2 = vsel %vm1090_vm11, %v1092_v35, %v1088_v7 }
 0x16d   : > { %1376 = vmatmul.bf16.gmra.mxu2 %v1223_v53  ;;  %v1889_v37 = vpop.eup %1888  ;;  %v1094_v30 = vmul.f32 %v1093_v2, %v1069_v27 }
 0x16e   : > { %v1161_v44 = vmul.f32 %v1889_v37, %v1159_v13  ;;  %vm1166_vm12 = vweird.f32 %v1889_v37 }
 0x16f   : > { %vm1167_vm14 = vmor %vm1165_vm13, %vm1166_vm12  ;;  %v1690_v10 = vclamps-f32 %v1094_v30, 1.0 }
 0x170   : > { %v1162_v49 = vsub.f32 1.0, %v1161_v44 }
 0x171   : > { %v1190_v25 = vadd.f32 1.0, %v1690_v10 }
 0x172   : > { %v1163_v14 = vmul.f32 %v1889_v37, %v1162_v49 }
 0x173   : > { %v1206_v43 = vmul.f32 %v1190_v25, %v518_v57 }
 0x174   : > { %v1164_v8 = vadd.f32 %v1889_v37, %v1163_v14 }
 0x176   : > { %v1168_v12 = vsel %vm1167_vm14, %v1889_v37, %v1164_v8 }
 0x177   : > { %v1173_v58 = vsel %vm1170_vm15, %v1172_v51, %v1168_v12 }
 0x178   : > { %v1174_v56 = vmul.f32 %v1173_v58, %v1149_v55 }
 0x17a   : > { %v1692_v19 = vclamps-f32 %v1174_v56, 1.0 }
 0x17c   : > { %v1192_v24 = vadd.f32 1.0, %v1692_v19 }
 0x17e   : > { %v1208_v41 = vmul.f32 %v1192_v24, %v520_v22 }
 0x180   : > { %v1224_v52 = vpack.c.bf16 %v1208_v41, %v1206_v43 }
 0x182   : > { %1405 = vmatmul.bf16.gmra.mxu3 %v1224_v52 }
 0x1aa   : > { %v1362_v3 = vpop.f32.mrf.mxu2 }
 0x1b0   : > { %v1391_v31 = vpop.f32.mrf.mxu3 }
 0x1b1   : > { %v1392_v62 = vadd.f32 %v1391_v31, %v1362_v3 }
 0x1b2   : > { %v1364_v40 = vpop.f32.mrf.mxu2 }
 0x1b3   : > { %v1442_v18 = vadd.f32 %v1857_v48, %v1392_v62 }
 0x1b5   : > { %1450 = vst [vmem:[%s2871_s10] sm:$0xff] %v1442_v18 }
 0x1b8   : > { %v1393_v54 = vpop.f32.mrf.mxu3 }
 0x1b9   : > { %v1394_v34 = vadd.f32 %v1393_v54, %v1364_v40 }
 0x1ba   : > { %v1367_v28 = vpop.f32.mrf.mxu2 }
 0x1bb   : > { %v1443_v26 = vadd.f32 %v1857_v48, %v1394_v34 }
 0x1bd   : > { %1451 = vst [vmem:[%s2871_s10 + $0x8] sm:$0xff] %v1443_v26 }
 0x1c2   : > { %v1369_v23 = vpop.f32.mrf.mxu2 }
 0x1cb   : > { %v1396_v21 = vpop.f32.mrf.mxu3 }
 0x1cc   : > { %v1397_v9 = vadd.f32 %v1396_v21, %v1367_v28 }
 0x1ce   : > { %v1444_v61 = vadd.f32 %v1857_v48, %v1397_v9 }
 0x1d0   : > { %1452 = vst [vmem:[%s2871_s10 + $0x10] sm:$0xff] %v1444_v61 }
 0x1d3   : > { %v1398_v50 = vpop.f32.mrf.mxu3 }
 0x1d4   : > { %v1399_v63 = vadd.f32 %v1398_v50, %v1369_v23 }
 0x1d6   : > { %v1445_v13 = vadd.f32 %v1857_v48, %v1399_v63 }
 0x1d8   : > { %1453 = vst [vmem:[%s2871_s10 + $0x18] sm:$0xff] %v1445_v13 }
 0x1dd   : > { %v1372_v4 = vpop.f32.mrf.mxu2 }
 0x1e5   : > { %v1374_v46 = vpop.f32.mrf.mxu2 }
 0x1e6   : > { %v1401_v32 = vpop.f32.mrf.mxu3 }
 0x1e7   : > { %v1402_v36 = vadd.f32 %v1401_v32, %v1372_v4 }
 0x1e9   : > { %v1446_v39 = vadd.f32 %v1857_v48, %v1402_v36 }
 0x1eb   : > { %1454 = vst [vmem:[%s2871_s10 + $0x20] sm:$0xff] %v1446_v39 }
 0x1ee   : > { %v1403_v11 = vpop.f32.mrf.mxu3 }
 0x1ef   : > { %v1404_v59 = vadd.f32 %v1403_v11, %v1374_v46 }
 0x1f0   : > { %v1377_v0 = vpop.f32.mrf.mxu2 }
 0x1f1   : > { %v1447_v42 = vadd.f32 %v1857_v48, %v1404_v59 }
 0x1f3   : > { %1455 = vst [vmem:[%s2871_s10 + $0x28] sm:$0xff] %v1447_v42 }
 0x1f8   : > { %v1379_v53 = vpop.f32.mrf.mxu2 }
 0x205   : > { %v1406_v6 = vpop.f32.mrf.mxu3 }
 0x206   : > { %v1407_v16 = vadd.f32 %v1406_v6, %v1377_v0 }
 0x208   : > { %v1448_v17 = vadd.f32 %v1857_v48, %v1407_v16 }
 0x20a   : > { %1456 = vst [vmem:[%s2871_s10 + $0x30] sm:$0xff] %v1448_v17 }
 0x20d   : > { %v1408_v20 = vpop.f32.mrf.mxu3 }
 0x20e   : > { %v1409_v5 = vadd.f32 %v1408_v20, %v1379_v53 }
 0x210   : > { %v1449_v7 = vadd.f32 %v1857_v48, %v1409_v5 }
 0x212   : > { %1457 = vst [vmem:[%s2871_s10 + $0x38] sm:$0xff] %v1449_v7 }
 0x213   : > { %1917 = shalt.err (!%p1914_p5)
}
 0x214   : > { %s1970_s29 = smov 128   ;;  %s1971_s10 = smov 8  }
 0x215   : > { %1799 = dma.vmem_to_hbm [thread:$0]  (%p2042_p4), %s1472_s15, 1024, %s1474_s16, %s1459_s17, %s1970_s29, %s1970_s29, %s1971_s10  }
 0x216 PF: > { %p1805_p6 = scmp.ge.s32.totalorder %s1968_s23, 2  ;;  %s1488_s11 = sand.u32 1, %s1948_s18  }
 0x217   : > { %s1489_s12 = scalar_lea.sflag [#allocation3], %s1488_s11 }
 0x218   : > { %p1802_p7 = pnand %p1805_p6, %p2049_p8 }
 0x21a   : > { %p1803_p9 = pneg %p1802_p7 }
 0x21c   : > { %1943 = dma.done.wait (%p1803_p9), %s1489_s12, 1024  }
 0x21d   : > { %1945 = vsyncadd (%p1803_p9), %s1489_s12, 4294966272  ;;  %s18_s23 = sadd.s32 1, %s1968_s23   ;;  %s2979_s18 = smov %s1952_s19 }
 0x21e   : > { %p15_p10 = scmp.ge.s32.totalorder %s18_s23, 4   ;;  %s2980_s19 = smov %s1956_s20 }
 0x21f   : > { %s2981_s20 = smov %s2055_s6  ;;  %s2982_s21 = smov %s1964_s22 }
 0x220   : > { %s2983_s22 = smov %s2985_s26  ;;  %17 = sbr.rel (!%p15_p10) target bundleno = 4 (0x4), region = 92 }
 0x225   :  { %1495 = vsyncpa [#allocation3], 1 }
 0x226   :  { %1497 = vsyncpa [#allocation3 + $0x1], 1 }

</bundles_post_ra>
